<compile_context>
chip_gen: v7x
topology: tpu7x:2x2x1
jax: 0.10.0
libtpu: 0.0.40
codegen_flags: <defaults>
</compile_context>

<pallas_src>
import functools

import jax
import jax.numpy as jnp
from jax.experimental import pallas as pl
from jax.experimental.pallas import tpu as pltpu

KH = KW = 2      # conv kernel size
PK = 2           # max-pool kernel / stride
NEG = -1e30      # logit padding value (exp -> 0)


# ----------------------------- fused Pallas kernel -------------------------- #

def shallow_cnn_kernel(patches_ref, wct_ref, bc_ref, w1_ref, b1_ref,
                       w2_ref, b2_ref, out_ref, *, cout, np_pad, tb):
    """One TB-sized batch block per grid step.

    patches_ref: (1, KP, 4*TB*NP)  transposed im2col, lanes ordered (tap, tb, s)
    wct_ref:     (COUT, KP)        conv weight, k = (ky,kx,cin), zero-padded to KP
    bc_ref:      (COUT, 1)
    w1_ref:      (COUT*NP, HIDDEN) fc1 weight, rows = (c, s) torch flatten order,
                                   spatial zero-padded to NP
    b1_ref:      (1, HIDDEN)
    w2_ref:      (HIDDEN, NCPAD)   fc2 weight, classes zero-padded to 128 lanes
    b2_ref:      (1, NCPAD)        padded classes get NEG bias
    out_ref:     (TB, NCPAD)
    """
    lane_blk = tb * np_pad

    # conv for all TB samples and all 4 pool taps: ONE matmul (COUT,KP)@(KP,4*TB*NP)
    conv = jnp.dot(wct_ref[...], patches_ref[0],
                   preferred_element_type=jnp.float32)            # (COUT, 4*TB*NP)

    # 2x2/2 max-pool: max over the 4 aligned lane slices (one per tap)
    m = jnp.maximum(
        jnp.maximum(conv[:, 0 * lane_blk:1 * lane_blk],
                    conv[:, 1 * lane_blk:2 * lane_blk]),
        jnp.maximum(conv[:, 2 * lane_blk:3 * lane_blk],
                    conv[:, 3 * lane_blk:4 * lane_blk]))          # (COUT, TB*NP)

    # bias + ReLU hoisted after the tap max (bias is tap-invariant, max monotone)
    pooled = jnp.maximum(m + bc_ref[...], 0.0)                    # (COUT, TB*NP)

    # relayout into the fc1 LHS (TB, COUT*NP) in torch (c, hp, wp) feature order.
    # Each piece is a 128-aligned lane slice of one sublane row; tiny data.
    rows = []
    for b in range(tb):
        rows.append(jnp.concatenate(
            [pooled[c:c + 1, b * np_pad:(b + 1) * np_pad] for c in range(cout)],
            axis=1))                                              # (1, COUT*NP)
    feats = jnp.concatenate(rows, axis=0)                         # (TB, COUT*NP)

    # fc1: ONE dot (padded spatial columns hit zero rows of w1)
    h = jnp.dot(feats, w1_ref[...], preferred_element_type=jnp.float32)
    h = jnp.maximum(h + b1_ref[...], 0.0)                         # (TB, HIDDEN)

    # fc2 + log_softmax (padded classes carry NEG bias -> exp == 0, max unaffected)
    logits = jnp.dot(h, w2_ref[...],
                     preferred_element_type=jnp.float32) + b2_ref[...]
    z = logits - jnp.max(logits, axis=-1, keepdims=True)
    out_ref[...] = z - jnp.log(jnp.sum(jnp.exp(z), axis=-1, keepdims=True))


# --------------------------------- JAX glue --------------------------------- #

def _build_patches(x_nhwc, np_pad, k_pad, tb):
    """Transposed im2col: (NB, KP, 4*TB*NP); lanes ordered (tap, tb, spatial)."""
    B, H, W, Cin = x_nhwc.shape
    Ho, Wo = H - KH + 1, W - KW + 1
    Hp, Wp = Ho // PK, Wo // PK
    K = KH * KW * Cin
    taps = []
    for dy in range(PK):
        for dx in range(PK):
            rows = []
            for ky in range(KH):
                for kx in range(KW):
                    r0, c0 = dy + ky, dx + kx
                    rows.append(x_nhwc[:, r0:r0 + PK * Hp:PK,
                                       c0:c0 + PK * Wp:PK, :])    # (B,Hp,Wp,Cin)
            patch = jnp.stack(rows, axis=3)                       # (B,Hp,Wp,KH*KW,Cin)
            patch = patch.reshape(B, Hp * Wp, K)
            patch = jnp.transpose(patch, (0, 2, 1))               # (B, K, Hp*Wp)
            patch = jnp.pad(patch, ((0, 0), (0, k_pad - K),
                                    (0, np_pad - Hp * Wp)))       # (B, KP, NP)
            taps.append(patch)
    p = jnp.stack(taps, axis=0)                                   # (4, B, KP, NP)
    nb = B // tb
    p = p.reshape(PK * PK, nb, tb, k_pad, np_pad)
    p = jnp.transpose(p, (1, 3, 0, 2, 4))                         # (NB, KP, 4, TB, NP)
    return p.reshape(nb, k_pad, PK * PK * tb * np_pad)


def shallow_cnn_forward(x_nchw, params, nclass):
    """Pallas implementation of ShallowCNN.forward.  x_nchw: (B, CIN, H, W) f32."""
    wct, bc, w1_2d, b1, w2p, b2p = params
    B = x_nchw.shape[0]
    cout, kp = wct.shape
    f_total, hidden = w1_2d.shape
    np_pad = f_total // cout
    ncpad = w2p.shape[1]

    tb = B if B <= 8 else 8            # samples per grid step (fills f32 sublanes)
    assert B % tb == 0
    nb = B // tb

    x_nhwc = jnp.transpose(x_nchw, (0, 2, 3, 1))
    patches = _build_patches(x_nhwc, np_pad, kp, tb)              # (NB, KP, 4*TB*NP)

    kernel = functools.partial(shallow_cnn_kernel,
                               cout=cout, np_pad=np_pad, tb=tb)
    out = pl.pallas_call(
        kernel,
        out_shape=jax.ShapeDtypeStruct((B, ncpad), jnp.float32),
        grid=(nb,),
        in_specs=[
            pl.BlockSpec((1, kp, PK * PK * tb * np_pad), lambda i: (i, 0, 0)),
            pl.BlockSpec((cout, kp), lambda i: (0, 0)),           # conv weight
            pl.BlockSpec((cout, 1), lambda i: (0, 0)),            # conv bias
            pl.BlockSpec((f_total, hidden), lambda i: (0, 0)),    # fc1 weight (2-D)
            pl.BlockSpec((1, hidden), lambda i: (0, 0)),          # fc1 bias
            pl.BlockSpec((hidden, ncpad), lambda i: (0, 0)),      # fc2 weight (padded)
            pl.BlockSpec((1, ncpad), lambda i: (0, 0)),           # fc2 bias (padded)
        ],
        out_specs=pl.BlockSpec((tb, ncpad), lambda i: (i, 0)),
        compiler_params=pltpu.CompilerParams(
            # batch is kept on one core: weights dominate HBM traffic, megacore
            # batch-splitting would duplicate that stream (review item for v7x)
            dimension_semantics=("arbitrary",),
            vmem_limit_bytes=32 * 1024 * 1024),
    )(patches, wct, bc, w1_2d, b1, w2p, b2p)
    return out[:, :nclass]


# --------------------------- parameters & reference ------------------------- #

def init_params(key, cin, cout, hp, wp, np_pad, k_pad, hidden, nclass, ncpad):
    ks = jax.random.split(key, 6)
    flat = cout * hp * wp

    def u(k, shape, fan_in):
        bound = 1.0 / jnp.sqrt(jnp.float32(fan_in))
        return jax.random.uniform(k, shape, jnp.float32, -bound, bound)

    wc = u(ks[0], (cout, cin, KH, KW), cin * KH * KW)    # OIHW, like nn.Conv2d
    bc = u(ks[1], (cout,), cin * KH * KW)
    w1 = u(ks[2], (flat, hidden), flat)                  # torch (C,Hp,Wp) flatten order
    b1 = u(ks[3], (hidden,), flat)
    w2 = u(ks[4], (hidden, nclass), hidden)
    b2 = u(ks[5], (nclass,), hidden)
    torch_params = (wc, bc, w1, b1, w2, b2)

    K = KH * KW * cin
    # conv weight (COUT, KP): k flattened as (ky, kx, cin), zero-padded 12 -> 16
    wct = jnp.transpose(wc, (0, 2, 3, 1)).reshape(cout, K)
    wct = jnp.pad(wct, ((0, 0), (0, k_pad - K)))
    # fc1 weight as 2-D (COUT*NP, HIDDEN): rows in torch (c, hp, wp) order with
    # each channel's spatial block zero-padded to NP
    w1_2d = jnp.pad(w1.reshape(cout, hp * wp, hidden),
                    ((0, 0), (0, np_pad - hp * wp), (0, 0))).reshape(cout * np_pad,
                                                                     hidden)
    # fc2 padded to a lane-dense class dim; padded classes get NEG bias
    w2p = jnp.pad(w2, ((0, 0), (0, ncpad - nclass)))
    b2p = jnp.pad(b2, ((0, ncpad - nclass),), constant_values=NEG).reshape(1, ncpad)
    # TODO(synk): bf16 storage for wct/w1 with f32 accumulation halves weight DMA
    # at the real size, but stresses the 1e-4 check on the ~123K-deep contraction.
    kernel_params = (wct, bc.reshape(cout, 1), w1_2d,
                     b1.reshape(1, hidden), w2p, b2p)
    return kernel_params, torch_params


def reference_forward(x_nchw, torch_params):
    """Pure-JAX reference mirroring the PyTorch forward (NCHW, f32)."""
    wc, bc, w1, b1, w2, b2 = torch_params
    y = jax.lax.conv_general_dilated(
        x_nchw, wc, (1, 1), "VALID",
        dimension_numbers=("NCHW", "OIHW", "NCHW"))
    y = jnp.maximum(y + bc.reshape(1, -1, 1, 1), 0.0)
    B, C, Ho, Wo = y.shape
    Hp, Wp = Ho // PK, Wo // PK
    y = y[:, :, :PK * Hp, :PK * Wp].reshape(B, C, Hp, PK, Wp, PK).max(axis=(3, 5))
    f = y.reshape(B, -1)                       # torch flatten(start_dim=1), NCHW order
    h = jnp.maximum(f @ w1 + b1.reshape(1, -1), 0.0)
    logits = h @ w2 + b2.reshape(1, -1)
    return jax.nn.log_softmax(logits, axis=1)


# ------------------------------------ main ----------------------------------- #

if __name__ == "__main__":
    B, CIN, H, W = 2, 3, 16, 16          # small stand-in for the 224x224 torch input
    COUT, HIDDEN, NCLASS = 10, 256, 3
    NCPAD = 128                          # lane-dense padded class dim
    Hp = (H - KH + 1) // PK
    Wp = (W - KW + 1) // PK
    NP = ((Hp * Wp + 127) // 128) * 128  # pooled spatial size padded to lane multiple
    KP = ((KH * KW * CIN + 7) // 8) * 8  # contraction dim padded to sublane multiple

    key = jax.random.PRNGKey(0)
    kx, kp = jax.random.split(key)
    x = jax.random.normal(kx, (B, CIN, H, W), jnp.float32)
    params, torch_params = init_params(kp, CIN, COUT, Hp, Wp, NP, KP,
                                       HIDDEN, NCLASS, NCPAD)

    fwd = jax.jit(functools.partial(shallow_cnn_forward, nclass=NCLASS))
    out = jax.block_until_ready(fwd(x, params))
    ref = jax.block_until_ready(reference_forward(x, torch_params))

    assert out.shape == (B, NCLASS), out.shape
    assert jnp.allclose(out, ref, atol=1e-4, rtol=1e-4), (out, ref)
    print("KERNEL_OK")
</pallas_src>

<mosaic_0001>
module attributes {stable_mosaic.version = 11 : i64} {
  func.func @shallow_cnn_kernel(%arg0: i32, %arg1: memref<1x16x1024xf32, #tpu.memory_space<vmem>>, %arg2: memref<10x16xf32, #tpu.memory_space<vmem>>, %arg3: memref<10x1xf32, #tpu.memory_space<vmem>>, %arg4: memref<1280x256xf32, #tpu.memory_space<vmem>>, %arg5: memref<1x256xf32, #tpu.memory_space<vmem>>, %arg6: memref<256x128xf32, #tpu.memory_space<vmem>>, %arg7: memref<1x128xf32, #tpu.memory_space<vmem>>, %arg8: memref<2x128xf32, #tpu.memory_space<vmem>>) attributes {dimension_semantics = [#tpu.dimension_semantics<arbitrary>], iteration_bounds = array<i64: 1>, scalar_prefetch = 0 : i64, scratch_operands = 0 : i64, tpu.core_type = #tpu.core_type<tc>, window_params = [{transform_indices = @transform_0, window_bounds = array<i64: 1, 16, 1024>}, {pipeline_mode = #tpu.pipeline_mode<synchronous>, transform_indices = @transform_1, window_bounds = array<i64: 10, 16>}, {pipeline_mode = #tpu.pipeline_mode<synchronous>, transform_indices = @transform_2, window_bounds = array<i64: 10, 1>}, {pipeline_mode = #tpu.pipeline_mode<synchronous>, transform_indices = @transform_3, window_bounds = array<i64: 1280, 256>}, {pipeline_mode = #tpu.pipeline_mode<synchronous>, transform_indices = @transform_4, window_bounds = array<i64: 1, 256>}, {pipeline_mode = #tpu.pipeline_mode<synchronous>, transform_indices = @transform_5, window_bounds = array<i64: 256, 128>}, {pipeline_mode = #tpu.pipeline_mode<synchronous>, transform_indices = @transform_6, window_bounds = array<i64: 1, 128>}, {transform_indices = @transform_7, window_bounds = array<i64: 2, 128>}]} {
    %c0 = arith.constant 0 : index
    %c0_0 = arith.constant 0 : index
    %0 = vector.load %arg2[%c0, %c0_0] : memref<10x16xf32, #tpu.memory_space<vmem>>, vector<10x16xf32>
    %c0_1 = arith.constant 0 : index
    %c0_2 = arith.constant 0 : index
    %c0_3 = arith.constant 0 : index
    %1 = vector.load %arg1[%c0_1, %c0_2, %c0_3] : memref<1x16x1024xf32, #tpu.memory_space<vmem>>, vector<1x16x1024xf32>
    %2 = vector.shape_cast %1 : vector<1x16x1024xf32> to vector<16x1024xf32>
    %cst = arith.constant dense<0.000000e+00> : vector<10x1024xf32>
    %3 = tpu.matmul %0, %2, %cst {dimension_numbers = #tpu.dot_dimension_numbers<[1], [0], [0], [1], [0, 0, 1, 1], [], []>} : vector<10x16xf32>, vector<16x1024xf32>, vector<10x1024xf32> -> vector<10x1024xf32>
    %4 = vector.extract_strided_slice %3 {offsets = [0, 0], sizes = [10, 256], strides = [1, 1]} : vector<10x1024xf32> to vector<10x256xf32>
    %5 = vector.extract_strided_slice %3 {offsets = [0, 256], sizes = [10, 256], strides = [1, 1]} : vector<10x1024xf32> to vector<10x256xf32>
    %6 = arith.maximumf %4, %5 : vector<10x256xf32>
    %7 = vector.extract_strided_slice %3 {offsets = [0, 512], sizes = [10, 256], strides = [1, 1]} : vector<10x1024xf32> to vector<10x256xf32>
    %8 = vector.extract_strided_slice %3 {offsets = [0, 768], sizes = [10, 256], strides = [1, 1]} : vector<10x1024xf32> to vector<10x256xf32>
    %9 = arith.maximumf %7, %8 : vector<10x256xf32>
    %10 = arith.maximumf %6, %9 : vector<10x256xf32>
    %c0_4 = arith.constant 0 : index
    %c0_5 = arith.constant 0 : index
    %11 = vector.load %arg3[%c0_4, %c0_5] : memref<10x1xf32, #tpu.memory_space<vmem>>, vector<10x1xf32>
    %12 = vector.broadcast %11 : vector<10x1xf32> to vector<10x256xf32>
    %13 = arith.addf %10, %12 : vector<10x256xf32>
    %cst_6 = arith.constant 0.000000e+00 : f32
    %14 = vector.broadcast %cst_6 : f32 to vector<10x256xf32>
    %15 = arith.maximumf %13, %14 : vector<10x256xf32>
    %16 = vector.extract_strided_slice %15 {offsets = [0, 0], sizes = [1, 128], strides = [1, 1]} : vector<10x256xf32> to vector<1x128xf32>
    %17 = vector.extract_strided_slice %15 {offsets = [1, 0], sizes = [1, 128], strides = [1, 1]} : vector<10x256xf32> to vector<1x128xf32>
    %18 = vector.extract_strided_slice %15 {offsets = [2, 0], sizes = [1, 128], strides = [1, 1]} : vector<10x256xf32> to vector<1x128xf32>
    %19 = vector.extract_strided_slice %15 {offsets = [3, 0], sizes = [1, 128], strides = [1, 1]} : vector<10x256xf32> to vector<1x128xf32>
    %20 = vector.extract_strided_slice %15 {offsets = [4, 0], sizes = [1, 128], strides = [1, 1]} : vector<10x256xf32> to vector<1x128xf32>
    %21 = vector.extract_strided_slice %15 {offsets = [5, 0], sizes = [1, 128], strides = [1, 1]} : vector<10x256xf32> to vector<1x128xf32>
    %22 = vector.extract_strided_slice %15 {offsets = [6, 0], sizes = [1, 128], strides = [1, 1]} : vector<10x256xf32> to vector<1x128xf32>
    %23 = vector.extract_strided_slice %15 {offsets = [7, 0], sizes = [1, 128], strides = [1, 1]} : vector<10x256xf32> to vector<1x128xf32>
    %24 = vector.extract_strided_slice %15 {offsets = [8, 0], sizes = [1, 128], strides = [1, 1]} : vector<10x256xf32> to vector<1x128xf32>
    %25 = vector.extract_strided_slice %15 {offsets = [9, 0], sizes = [1, 128], strides = [1, 1]} : vector<10x256xf32> to vector<1x128xf32>
    %26 = tpu.concatenate %16, %17, %18, %19, %20, %21, %22, %23, %24, %25 in 1 : vector<1x128xf32>, vector<1x128xf32>, vector<1x128xf32>, vector<1x128xf32>, vector<1x128xf32>, vector<1x128xf32>, vector<1x128xf32>, vector<1x128xf32>, vector<1x128xf32>, vector<1x128xf32> -> vector<1x1280xf32>
    %27 = vector.extract_strided_slice %15 {offsets = [0, 128], sizes = [1, 128], strides = [1, 1]} : vector<10x256xf32> to vector<1x128xf32>
    %28 = vector.extract_strided_slice %15 {offsets = [1, 128], sizes = [1, 128], strides = [1, 1]} : vector<10x256xf32> to vector<1x128xf32>
    %29 = vector.extract_strided_slice %15 {offsets = [2, 128], sizes = [1, 128], strides = [1, 1]} : vector<10x256xf32> to vector<1x128xf32>
    %30 = vector.extract_strided_slice %15 {offsets = [3, 128], sizes = [1, 128], strides = [1, 1]} : vector<10x256xf32> to vector<1x128xf32>
    %31 = vector.extract_strided_slice %15 {offsets = [4, 128], sizes = [1, 128], strides = [1, 1]} : vector<10x256xf32> to vector<1x128xf32>
    %32 = vector.extract_strided_slice %15 {offsets = [5, 128], sizes = [1, 128], strides = [1, 1]} : vector<10x256xf32> to vector<1x128xf32>
    %33 = vector.extract_strided_slice %15 {offsets = [6, 128], sizes = [1, 128], strides = [1, 1]} : vector<10x256xf32> to vector<1x128xf32>
    %34 = vector.extract_strided_slice %15 {offsets = [7, 128], sizes = [1, 128], strides = [1, 1]} : vector<10x256xf32> to vector<1x128xf32>
    %35 = vector.extract_strided_slice %15 {offsets = [8, 128], sizes = [1, 128], strides = [1, 1]} : vector<10x256xf32> to vector<1x128xf32>
    %36 = vector.extract_strided_slice %15 {offsets = [9, 128], sizes = [1, 128], strides = [1, 1]} : vector<10x256xf32> to vector<1x128xf32>
    %37 = tpu.concatenate %27, %28, %29, %30, %31, %32, %33, %34, %35, %36 in 1 : vector<1x128xf32>, vector<1x128xf32>, vector<1x128xf32>, vector<1x128xf32>, vector<1x128xf32>, vector<1x128xf32>, vector<1x128xf32>, vector<1x128xf32>, vector<1x128xf32>, vector<1x128xf32> -> vector<1x1280xf32>
    %38 = tpu.concatenate %26, %37 in 0 : vector<1x1280xf32>, vector<1x1280xf32> -> vector<2x1280xf32>
    %c0_7 = arith.constant 0 : index
    %c0_8 = arith.constant 0 : index
    %39 = vector.load %arg4[%c0_7, %c0_8] : memref<1280x256xf32, #tpu.memory_space<vmem>>, vector<1280x256xf32>
    %cst_9 = arith.constant dense<0.000000e+00> : vector<2x256xf32>
    %40 = tpu.matmul %38, %39, %cst_9 {dimension_numbers = #tpu.dot_dimension_numbers<[1], [0], [0], [1], [0, 0, 1, 1], [], []>} : vector<2x1280xf32>, vector<1280x256xf32>, vector<2x256xf32> -> vector<2x256xf32>
    %c0_10 = arith.constant 0 : index
    %c0_11 = arith.constant 0 : index
    %41 = vector.load %arg5[%c0_10, %c0_11] : memref<1x256xf32, #tpu.memory_space<vmem>>, vector<1x256xf32>
    %42 = vector.broadcast %41 : vector<1x256xf32> to vector<2x256xf32>
    %43 = arith.addf %40, %42 : vector<2x256xf32>
    %cst_12 = arith.constant 0.000000e+00 : f32
    %44 = vector.broadcast %cst_12 : f32 to vector<2x256xf32>
    %45 = arith.maximumf %43, %44 : vector<2x256xf32>
    %c0_13 = arith.constant 0 : index
    %c0_14 = arith.constant 0 : index
    %46 = vector.load %arg6[%c0_13, %c0_14] : memref<256x128xf32, #tpu.memory_space<vmem>>, vector<256x128xf32>
    %cst_15 = arith.constant dense<0.000000e+00> : vector<2x128xf32>
    %47 = tpu.matmul %45, %46, %cst_15 {dimension_numbers = #tpu.dot_dimension_numbers<[1], [0], [0], [1], [0, 0, 1, 1], [], []>} : vector<2x256xf32>, vector<256x128xf32>, vector<2x128xf32> -> vector<2x128xf32>
    %c0_16 = arith.constant 0 : index
    %c0_17 = arith.constant 0 : index
    %48 = vector.load %arg7[%c0_16, %c0_17] : memref<1x128xf32, #tpu.memory_space<vmem>>, vector<1x128xf32>
    %49 = vector.broadcast %48 : vector<1x128xf32> to vector<2x128xf32>
    %50 = arith.addf %47, %49 : vector<2x128xf32>
    %cst_18 = arith.constant dense<0xFF800000> : vector<2xf32>
    %51 = vector.multi_reduction <maximumf>, %50, %cst_18 [1] : vector<2x128xf32> to vector<2xf32>
    %52 = vector.shape_cast %51 : vector<2xf32> to vector<2x1xf32>
    %53 = vector.broadcast %52 : vector<2x1xf32> to vector<2x128xf32>
    %54 = arith.subf %50, %53 : vector<2x128xf32>
    %55 = math.exp %54 : vector<2x128xf32>
    %cst_19 = arith.constant dense<0.000000e+00> : vector<2xf32>
    %56 = vector.multi_reduction <add>, %55, %cst_19 [1] : vector<2x128xf32> to vector<2xf32>
    %57 = vector.shape_cast %56 : vector<2xf32> to vector<2x1xf32>
    %58 = math.log %57 : vector<2x1xf32>
    %59 = vector.broadcast %58 : vector<2x1xf32> to vector<2x128xf32>
    %60 = arith.subf %54, %59 : vector<2x128xf32>
    %c0_20 = arith.constant 0 : index
    %c0_21 = arith.constant 0 : index
    %61 = vector.load %arg8[%c0_20, %c0_21] : memref<2x128xf32, #tpu.memory_space<vmem>>, vector<2x128xf32>
    tpu.vector_store %arg8[%c0_20, %c0_21], %60 {strides = array<i32>} : memref<2x128xf32, #tpu.memory_space<vmem>>, vector<2x128xf32>,
    return
  }
  func.func @transform_0(%arg0: i32) -> (i32, i32, i32) {
    %c0_i32 = arith.constant 0 : i32
    %c0_i32_0 = arith.constant 0 : i32
    %c0_i32_1 = arith.constant 0 : i32
    return %arg0, %c0_i32, %c0_i32_0 : i32, i32, i32
  }
  func.func @transform_1(%arg0: i32) -> (i32, i32) {
    %c0_i32 = arith.constant 0 : i32
    %c0_i32_0 = arith.constant 0 : i32
    %c0_i32_1 = arith.constant 0 : i32
    return %c0_i32, %c0_i32_0 : i32, i32
  }
  func.func @transform_2(%arg0: i32) -> (i32, i32) {
    %c0_i32 = arith.constant 0 : i32
    %c0_i32_0 = arith.constant 0 : i32
    %c0_i32_1 = arith.constant 0 : i32
    return %c0_i32, %c0_i32_0 : i32, i32
  }
  func.func @transform_3(%arg0: i32) -> (i32, i32) {
    %c0_i32 = arith.constant 0 : i32
    %c0_i32_0 = arith.constant 0 : i32
    %c0_i32_1 = arith.constant 0 : i32
    return %c0_i32, %c0_i32_0 : i32, i32
  }
  func.func @transform_4(%arg0: i32) -> (i32, i32) {
    %c0_i32 = arith.constant 0 : i32
    %c0_i32_0 = arith.constant 0 : i32
    %c0_i32_1 = arith.constant 0 : i32
    return %c0_i32, %c0_i32_0 : i32, i32
  }
  func.func @transform_5(%arg0: i32) -> (i32, i32) {
    %c0_i32 = arith.constant 0 : i32
    %c0_i32_0 = arith.constant 0 : i32
    %c0_i32_1 = arith.constant 0 : i32
    return %c0_i32, %c0_i32_0 : i32, i32
  }
  func.func @transform_6(%arg0: i32) -> (i32, i32) {
    %c0_i32 = arith.constant 0 : i32
    %c0_i32_0 = arith.constant 0 : i32
    %c0_i32_1 = arith.constant 0 : i32
    return %c0_i32, %c0_i32_0 : i32, i32
  }
  func.func @transform_7(%arg0: i32) -> (i32, i32) {
    %c0_i32 = arith.constant 0 : i32
    %c0_i32_0 = arith.constant 0 : i32
    return %arg0, %c0_i32 : i32, i32
  }
}

</mosaic_0001>

<bundles_post_ra>
// kernel: shallow_cnn_forward.1
= control target key start
LH: loop header
LB: loop body
LE: loop exit
PB: predicated region body
PF: predicated region fallthrough
CT: control target
= control target key end

     0   :  { %v1737_v5 = vmov 0.0   ;;  %v1738_v7 = vmov 0   ;;  %vm45_vm0 = vcmask 130048   ;;  %s2992_s0 = inlined_call_operand.vmem [shape: f32[1,16,1024], index: 0, kind: input, shape index: {}]   ;;  %s2993_s1 = inlined_call_operand.vmem [shape: f32[10,16], index: 1, kind: input, shape index: {}]   ;;  %s2994_s2 = inlined_call_operand.vmem [shape: f32[10,1], index: 2, kind: input, shape index: {}]   ;;  %s2995_s3 = inlined_call_operand.vmem [shape: f32[1280,256], index: 3, kind: input, shape index: {}]   ;;  %s2996_s4 = inlined_call_operand.vmem [shape: f32[1,256], index: 4, kind: input, shape index: {}]   ;;  %s2997_s5 = inlined_call_operand.vmem [shape: f32[256,128], index: 5, kind: input, shape index: {}]   ;;  %s2998_s6 = inlined_call_operand.vmem [shape: f32[1,128], index: 6, kind: input, shape index: {}]   ;;  %s2999_s7 = inlined_call_operand.hbm [shape: f32[2,128], index: 7, kind: output, shape index: {}]  }
   0x1   :  { %v30_v0 = vld [vmem:[%s2992_s0 + $0x8] sm:$0xff]  ;;  %v29_v2 = vld [vmem:[%s2992_s0] sm:$0xff]  ;;  %116 = vmatprep.mubr.f32.mxu1 %v1737_v5  ;;  %v32_v6 = vld [vmem:[%s2992_s0 + $0x18] sm:$0xff]  ;;  %1708 = vset.pattern.permute.xlu0 %v1738_v7 }
   0x2   :  { %v38_v1 = vld [vmem:[%s2992_s0 + $0x48] sm:$0xff]  ;;  %v37_v4 = vld [vmem:[%s2992_s0 + $0x40] sm:$0xff]  ;;  %v40_v9 = vld [vmem:[%s2992_s0 + $0x58] sm:$0xff] }
   0x3   :  { %v1327_v3 = vpack.c.bf16 %v38_v1, %v30_v0  ;;  %v1329_v8 = vpack.c.bf16 %v37_v4, %v29_v2  ;;  %v31_v10 = vld [vmem:[%s2992_s0 + $0x10] sm:$0xff]  ;;  %v1331_v12 = vpack.c.bf16 %v40_v9, %v32_v6  ;;  %v34_v13 = vld [vmem:[%s2992_s0 + $0x28] sm:$0xff]  ;;  %v1814_v15 = vld [vmem:[%s2993_s1] sm:$0xff] }
   0x4   :  { %v39_v11 = vld [vmem:[%s2992_s0 + $0x50] sm:$0xff]  ;;  %v42_v14 = vld [vmem:[%s2992_s0 + $0x68] sm:$0xff]  ;;  %v372_v18 = vld [vmem:[%s2994_s2] sm:$0xff] }
   0x5   :  { %1328 = vmatprep.subr.bf16.mxu1 %v1327_v3  ;;  %v1333_v16 = vpack.c.bf16 %v39_v11, %v31_v10  ;;  %v1335_v17 = vpack.c.bf16 %v42_v14, %v34_v13  ;;  %v1824_v19 = vld [vmem:[%s2993_s1 + $0x8] sm:$0x3]  ;;  %376 = vperm.xlu0 %1708, %v372_v18   ;;  %v581_v22 = vld [vmem:[%s2995_s3 + $0x418] sm:$0xff]  ;;  %v578_v23 = vld [vmem:[%s2995_s3 + $0x400] sm:$0xff] }
   0x6   :  { %1330 = vmatpush1.bf16.msra.mxu1 %v1329_v8  ;;  %v373_v20 = vld [vmem:[%s2994_s2 + $0x8] sm:$0x3]  ;;  %v33_v24 = vld [vmem:[%s2992_s0 + $0x20] sm:$0xff]  ;;  %v580_v27 = vld [vmem:[%s2995_s3 + $0x410] sm:$0xff] }
   0x7   :  { %1332 = vmatprep.subr.bf16.mxu1 %v1331_v12  ;;  %v579_v21 = vld [vmem:[%s2995_s3 + $0x408] sm:$0xff]  ;;  %v41_v25 = vld [vmem:[%s2992_s0 + $0x60] sm:$0xff]  ;;  %v36_v28 = vld [vmem:[%s2992_s0 + $0x38] sm:$0xff]  ;;  %v1473_v30 = vpack.c.bf16 %v580_v27, %v578_v23 }
   0x8   :  { %v1471_v26 = vpack.c.bf16 %v581_v22, %v579_v21  ;;  %v44_v29 = vld [vmem:[%s2992_s0 + $0x78] sm:$0xff]  ;;  %v583_v31 = vld [vmem:[%s2995_s3 + $0x428] sm:$0xff]  ;;  %v582_v33 = vld [vmem:[%s2995_s3 + $0x420] sm:$0xff]  ;;  %v1337_v35 = vpack.c.bf16 %v41_v25, %v33_v24 }
   0x9   :  { %1276 = vmatmul.mubr.msk.f32.vlgmr.msra.gmra.mrb[0].mxu1 %vm45_vm0, %v1814_v15  ;;  %381 = vperm.xlu0 %1708, %v373_v20   ;;  %v585_v32 = vld [vmem:[%s2995_s3 + $0x438] sm:$0xff]  ;;  %v584_v34 = vld [vmem:[%s2995_s3 + $0x430] sm:$0xff]  ;;  %v1339_v37 = vpack.c.bf16 %v44_v29, %v36_v28  ;;  %v587_v39 = vld [vmem:[%s2995_s3 + $0x448] sm:$0xff] }
   0xa   :  { %1334 = vmatpush1.bf16.msra.mxu1 %v1333_v16  ;;  %122 = vmatprep.mubr.f32.mxu1 %v1737_v5  ;;  %v1475_v36 = vpack.c.bf16 %v585_v32, %v583_v31  ;;  %v1477_v38 = vpack.c.bf16 %v584_v34, %v582_v33  ;;  %v589_v40 = vld [vmem:[%s2995_s3 + $0x458] sm:$0xff]  ;;  %v586_v42 = vld [vmem:[%s2995_s3 + $0x440] sm:$0xff]  ;;  %v588_v43 = vld [vmem:[%s2995_s3 + $0x450] sm:$0xff] }
   0xb   :  { %1336 = vmatprep.subr.bf16.mxu1 %v1335_v17  ;;  %1472 = vmatprep.subr.bf16.mxu0 %v1471_v26  ;;  %v1479_v41 = vpack.c.bf16 %v589_v40, %v587_v39  ;;  %v591_v44 = vld [vmem:[%s2995_s3 + $0x468] sm:$0xff]  ;;  %v593_v45 = vld [vmem:[%s2995_s3 + $0x478] sm:$0xff]  ;;  %v35_v46 = vld [vmem:[%s2992_s0 + $0x30] sm:$0xff]  ;;  %v1481_v49 = vpack.c.bf16 %v588_v43, %v586_v42 }
   0xc   :  { %1474 = vmatpush1.bf16.msra.mxu0 %v1473_v30  ;;  %v43_v47 = vld [vmem:[%s2992_s0 + $0x70] sm:$0xff]  ;;  %v451_v48 = vld [vmem:[%s2995_s3 + $0x8] sm:$0xff]  ;;  %v453_v50 = vld [vmem:[%s2995_s3 + $0x18] sm:$0xff]  ;;  %v1483_v51 = vpack.c.bf16 %v593_v45, %v591_v44 }
   0xd   :  { %1277 = vmatmul.mubr.msk.f32.gmra.mrb[2].mxu1 %vm45_vm0, %v1824_v19  ;;  %1476 = vmatprep.subr.bf16.mxu0 %v1475_v36  ;;  %v590_v52 = vld [vmem:[%s2995_s3 + $0x460] sm:$0xff]  ;;  %v592_v53 = vld [vmem:[%s2995_s3 + $0x470] sm:$0xff]  ;;  %v595_v54 = vld [vmem:[%s2995_s3 + $0x488] sm:$0xff]  ;;  %v1341_v56 = vpack.c.bf16 %v43_v47, %v35_v46  ;;  %v1343_v57 = vpack.c.bf16 %v453_v50, %v451_v48 }
   0xe   :  { %193 = vmatprep.mubr.f32.mxu1 %v1737_v5  ;;  %v597_v55 = vld [vmem:[%s2995_s3 + $0x498] sm:$0xff]  ;;  %v1485_v58 = vpack.c.bf16 %v592_v53, %v590_v52  ;;  %v594_v60 = vld [vmem:[%s2995_s3 + $0x480] sm:$0xff]  ;;  %v596_v61 = vld [vmem:[%s2995_s3 + $0x490] sm:$0xff] }
   0xf   :  { %v1487_v59 = vpack.c.bf16 %v597_v55, %v595_v54  ;;  %v599_v62 = vld [vmem:[%s2995_s3 + $0x4a8] sm:$0xff]  ;;  %v601_v63 = vld [vmem:[%s2995_s3 + $0x4b8] sm:$0xff]  ;;  %v450_v0 = vld [vmem:[%s2995_s3] sm:$0xff]  ;;  %v1489_v3 = vpack.c.bf16 %v596_v61, %v594_v60 }
  0x10   :  { %1478 = vmatpush1.bf16.msra.mxu0 %v1477_v38  ;;  %v452_v1 = vld [vmem:[%s2995_s3 + $0x10] sm:$0xff]  ;;  %v455_v2 = vld [vmem:[%s2995_s3 + $0x28] sm:$0xff] }
  0x11   :  { %1278 = vmatmul.mubr.msk.f32.vlgmr.msra.gmra.mrb[4].mxu1 %vm45_vm0, %v1814_v15  ;;  %1480 = vmatprep.subr.bf16.mxu0 %v1479_v41 }
  0x12   :  { %1338 = vmatpush1.bf16.msra.mxu1 %v1337_v35  ;;  %199 = vmatprep.mubr.f32.mxu1 %v1737_v5 }
  0x13   :  { %1340 = vmatprep.subr.bf16.mxu1 %v1339_v37 }
  0x14   :  { %1482 = vmatpush1.bf16.msra.mxu0 %v1481_v49 }
  0x15   :  { %1279 = vmatmul.mubr.msk.f32.gmra.mrb[6].mxu1 %vm45_vm0, %v1824_v19  ;;  %1484 = vmatprep.subr.bf16.mxu0 %v1483_v51 }
  0x16   :  { %270 = vmatprep.mubr.f32.mxu1 %v1737_v5 }
  0x18   :  { %1486 = vmatpush1.bf16.msra.mxu0 %v1485_v58 }
  0x19   :  { %1280 = vmatmul.mubr.msk.f32.vlgmr.msra.gmra.mrb[8].mxu1 %vm45_vm0, %v1814_v15 }
  0x1a   :  { %1342 = vmatpush1.bf16.msra.mxu1 %v1341_v56  ;;  %276 = vmatprep.mubr.f32.mxu1 %v1737_v5 }
  0x1b   :  { %1344 = vmatprep.subr.bf16.mxu1 %v1343_v57 }
  0x1c   :  { %12 = vsyncpa [#allocation3], 0  ;;  %v457_v4 = vld [vmem:[%s2995_s3 + $0x38] sm:$0xff]  ;;  %1488 = vmatprep.subr.bf16.mxu0 %v1487_v59  ;;  %v1491_v6 = vpack.c.bf16 %v601_v63, %v599_v62  ;;  %v598_v7 = vld [vmem:[%s2995_s3 + $0x4a0] sm:$0xff]  ;;  %v1345_v11 = vpack.c.bf16 %v452_v1, %v450_v0  ;;  %vm439_vm1 = vcmask 1040384   ;;  %vm1248_vm2 = vcmask 1041408  }
  0x1d   :  { %v600_v8 = vld [vmem:[%s2995_s3 + $0x4b0] sm:$0xff]  ;;  %1281 = vmatmul.mubr.msk.f32.gmra.mrb[10].mxu1 %vm45_vm0, %v1824_v19  ;;  %v603_v9 = vld [vmem:[%s2995_s3 + $0x4c8] sm:$0xff]  ;;  %v605_v10 = vld [vmem:[%s2995_s3 + $0x4d8] sm:$0xff]  ;;  %v1347_v12 = vpack.c.bf16 %v457_v4, %v455_v2  ;;  %1490 = vmatpush1.bf16.msra.mxu0 %v1489_v3 }
  0x1e   :  { %347 = vmatprep.mubr.f32.mxu1 %v1737_v5  ;;  %v454_v13 = vld [vmem:[%s2995_s3 + $0x20] sm:$0xff]  ;;  %v456_v14 = vld [vmem:[%s2995_s3 + $0x30] sm:$0xff]  ;;  %v459_v16 = vld [vmem:[%s2995_s3 + $0x48] sm:$0xff]  ;;  %v1493_v17 = vpack.c.bf16 %v600_v8, %v598_v7  ;;  %1492 = vmatprep.subr.bf16.mxu0 %v1491_v6  ;;  %v1495_v20 = vpack.c.bf16 %v605_v10, %v603_v9 }
  0x1f   :  { %v461_v18 = vld [vmem:[%s2995_s3 + $0x58] sm:$0xff]  ;;  %v602_v21 = vld [vmem:[%s2995_s3 + $0x4c0] sm:$0xff]  ;;  %v604_v22 = vld [vmem:[%s2995_s3 + $0x4d0] sm:$0xff]  ;;  %v1349_v23 = vpack.c.bf16 %v456_v14, %v454_v13 }
  0x20   :  { %v1351_v24 = vpack.c.bf16 %v461_v18, %v459_v16  ;;  %v458_v25 = vld [vmem:[%s2995_s3 + $0x40] sm:$0xff]  ;;  %v460_v26 = vld [vmem:[%s2995_s3 + $0x50] sm:$0xff]  ;;  %v1497_v27 = vpack.c.bf16 %v604_v22, %v602_v21  ;;  %v467_v32 = vld [vmem:[%s2995_s3 + $0x88] sm:$0xff] }
  0x21   :  { %1282 = vmatmul.mubr.msk.f32.vlgmr.msra.gmra.mrb[12].mxu1 %vm45_vm0, %v1814_v15  ;;  %1494 = vmatpush1.bf16.msra.mxu0 %v1493_v17  ;;  %v463_v15 = vld [vmem:[%s2995_s3 + $0x68] sm:$0xff]  ;;  %v1353_v28 = vpack.c.bf16 %v460_v26, %v458_v25  ;;  %v462_v30 = vld [vmem:[%s2995_s3 + $0x60] sm:$0xff]  ;;  %v464_v31 = vld [vmem:[%s2995_s3 + $0x70] sm:$0xff] }
  0x22   :  { %353 = vmatprep.mubr.f32.mxu1 %v1737_v5  ;;  %1346 = vmatpush1.bf16.msra.mxu1 %v1345_v11  ;;  %v465_v5 = vld [vmem:[%s2995_s3 + $0x78] sm:$0xff]  ;;  %v1357_v33 = vpack.c.bf16 %v464_v31, %v462_v30  ;;  %v466_v35 = vld [vmem:[%s2995_s3 + $0x80] sm:$0xff]  ;;  %v468_v36 = vld [vmem:[%s2995_s3 + $0x90] sm:$0xff] }
  0x23   :  { %1348 = vmatprep.subr.bf16.mxu1 %v1347_v12  ;;  %1496 = vmatprep.subr.bf16.mxu0 %v1495_v20  ;;  %v1355_v29 = vpack.c.bf16 %v465_v5, %v463_v15  ;;  %v471_v37 = vld [vmem:[%s2995_s3 + $0xa8] sm:$0xff]  ;;  %v473_v38 = vld [vmem:[%s2995_s3 + $0xb8] sm:$0xff]  ;;  %v1361_v39 = vpack.c.bf16 %v468_v36, %v466_v35  ;;  %v470_v41 = vld [vmem:[%s2995_s3 + $0xa0] sm:$0xff] }
  0x24   :  { %v1363_v40 = vpack.c.bf16 %v473_v38, %v471_v37  ;;  %v472_v42 = vld [vmem:[%s2995_s3 + $0xb0] sm:$0xff]  ;;  %v475_v43 = vld [vmem:[%s2995_s3 + $0xc8] sm:$0xff]  ;;  %v477_v44 = vld [vmem:[%s2995_s3 + $0xd8] sm:$0xff] }
  0x25   :  { %1283 = vmatmul.mubr.msk.f32.gmra.mrb[14].mxu1 %vm45_vm0, %v1824_v19  ;;  %1498 = vmatpush1.bf16.msra.mxu0 %v1497_v27  ;;  %v469_v19 = vld [vmem:[%s2995_s3 + $0x98] sm:$0xff]  ;;  %v1365_v45 = vpack.c.bf16 %v472_v42, %v470_v41  ;;  %v1367_v46 = vpack.c.bf16 %v477_v44, %v475_v43  ;;  %v474_v47 = vld [vmem:[%s2995_s3 + $0xc0] sm:$0xff]  ;;  %v476_v48 = vld [vmem:[%s2995_s3 + $0xd0] sm:$0xff] }
  0x26   :  { %1350 = vmatpush1.bf16.msra.mxu1 %v1349_v23  ;;  %v1359_v34 = vpack.c.bf16 %v469_v19, %v467_v32  ;;  %v1369_v49 = vpack.c.bf16 %v476_v48, %v474_v47  ;;  %v479_v50 = vld [vmem:[%s2995_s3 + $0xe8] sm:$0xff]  ;;  %v481_v51 = vld [vmem:[%s2995_s3 + $0xf8] sm:$0xff]  ;;  %v478_v53 = vld [vmem:[%s2995_s3 + $0xe0] sm:$0xff] }
  0x27   :  { %1352 = vmatprep.subr.bf16.mxu1 %v1351_v24  ;;  %v1371_v52 = vpack.c.bf16 %v481_v51, %v479_v50  ;;  %v480_v54 = vld [vmem:[%s2995_s3 + $0xf0] sm:$0xff]  ;;  %v607_v55 = vld [vmem:[%s2995_s3 + $0x4e8] sm:$0xff]  ;;  %v609_v57 = vld [vmem:[%s2995_s3 + $0x4f8] sm:$0xff] }
  0x28   :  { %v1373_v56 = vpack.c.bf16 %v480_v54, %v478_v53  ;;  %v606_v58 = vld [vmem:[%s2995_s3 + $0x4e0] sm:$0xff]  ;;  %v608_v59 = vld [vmem:[%s2995_s3 + $0x4f0] sm:$0xff]  ;;  %v1499_v60 = vpack.c.bf16 %v609_v57, %v607_v55  ;;  %v483_v62 = vld [vmem:[%s2995_s3 + $0x108] sm:$0xff] }
  0x29   :  { %v1501_v61 = vpack.c.bf16 %v608_v59, %v606_v58  ;;  %v485_v63 = vld [vmem:[%s2995_s3 + $0x118] sm:$0xff]  ;;  %v482_v1 = vld [vmem:[%s2995_s3 + $0x100] sm:$0xff]  ;;  %v484_v2 = vld [vmem:[%s2995_s3 + $0x110] sm:$0xff] }
  0x2a   :  { %1354 = vmatpush1.bf16.msra.mxu1 %v1353_v28  ;;  %1500 = vmatprep.subr.bf16.mxu0 %v1499_v60  ;;  %v1375_v0 = vpack.c.bf16 %v485_v63, %v483_v62  ;;  %v611_v3 = vld [vmem:[%s2995_s3 + $0x508] sm:$0xff]  ;;  %v1377_v4 = vpack.c.bf16 %v484_v2, %v482_v1  ;;  %v613_v6 = vld [vmem:[%s2995_s3 + $0x518] sm:$0xff]  ;;  %v610_v7 = vld [vmem:[%s2995_s3 + $0x500] sm:$0xff] }
  0x2b   :  { %1356 = vmatprep.subr.bf16.mxu1 %v1355_v29  ;;  %1502 = vmatpush1.bf16.msra.mxu0 %v1501_v61  ;;  %v612_v8 = vld [vmem:[%s2995_s3 + $0x510] sm:$0xff]  ;;  %v1503_v9 = vpack.c.bf16 %v613_v6, %v611_v3  ;;  %v487_v11 = vld [vmem:[%s2995_s3 + $0x128] sm:$0xff]  ;;  %v489_v12 = vld [vmem:[%s2995_s3 + $0x138] sm:$0xff] }
  0x2c   :  { %v1505_v10 = vpack.c.bf16 %v612_v8, %v610_v7  ;;  %v1379_v13 = vpack.c.bf16 %v489_v12, %v487_v11  ;;  %v486_v14 = vld [vmem:[%s2995_s3 + $0x120] sm:$0xff]  ;;  %v488_v16 = vld [vmem:[%s2995_s3 + $0x130] sm:$0xff]  ;;  %v615_v17 = vld [vmem:[%s2995_s3 + $0x528] sm:$0xff] }
  0x2d   :  { %1504 = vmatprep.subr.bf16.mxu0 %v1503_v9  ;;  %v1381_v18 = vpack.c.bf16 %v488_v16, %v486_v14  ;;  %v617_v20 = vld [vmem:[%s2995_s3 + $0x538] sm:$0xff]  ;;  %v614_v21 = vld [vmem:[%s2995_s3 + $0x520] sm:$0xff]  ;;  %v616_v22 = vld [vmem:[%s2995_s3 + $0x530] sm:$0xff] }
  0x2e   :  { %1358 = vmatpush1.bf16.msra.mxu1 %v1357_v33  ;;  %v1507_v23 = vpack.c.bf16 %v617_v20, %v615_v17  ;;  %v1509_v24 = vpack.c.bf16 %v616_v22, %v614_v21  ;;  %v491_v25 = vld [vmem:[%s2995_s3 + $0x148] sm:$0xff]  ;;  %v493_v26 = vld [vmem:[%s2995_s3 + $0x158] sm:$0xff]  ;;  %v490_v15 = vld [vmem:[%s2995_s3 + $0x140] sm:$0xff] }
  0x2f   :  { %1360 = vmatprep.subr.bf16.mxu1 %v1359_v34  ;;  %1506 = vmatpush1.bf16.msra.mxu0 %v1505_v10  ;;  %v1383_v27 = vpack.c.bf16 %v493_v26, %v491_v25  ;;  %v492_v5 = vld [vmem:[%s2995_s3 + $0x150] sm:$0xff]  ;;  %v619_v28 = vld [vmem:[%s2995_s3 + $0x548] sm:$0xff]  ;;  %v621_v30 = vld [vmem:[%s2995_s3 + $0x558] sm:$0xff] }
  0x30   :  { %1508 = vmatprep.subr.bf16.mxu0 %v1507_v23  ;;  %v1385_v29 = vpack.c.bf16 %v492_v5, %v490_v15  ;;  %v618_v31 = vld [vmem:[%s2995_s3 + $0x540] sm:$0xff]  ;;  %v620_v32 = vld [vmem:[%s2995_s3 + $0x550] sm:$0xff]  ;;  %v1511_v19 = vpack.c.bf16 %v621_v30, %v619_v28  ;;  %v495_v34 = vld [vmem:[%s2995_s3 + $0x168] sm:$0xff] }
  0x31   :  { %v1513_v33 = vpack.c.bf16 %v620_v32, %v618_v31  ;;  %v497_v35 = vld [vmem:[%s2995_s3 + $0x178] sm:$0xff]  ;;  %v494_v37 = vld [vmem:[%s2995_s3 + $0x160] sm:$0xff]  ;;  %v496_v38 = vld [vmem:[%s2995_s3 + $0x170] sm:$0xff] }
  0x32   :  { %1362 = vmatpush1.bf16.msra.mxu1 %v1361_v39  ;;  %v1387_v36 = vpack.c.bf16 %v497_v35, %v495_v34  ;;  %v623_v39 = vld [vmem:[%s2995_s3 + $0x568] sm:$0xff]  ;;  %v625_v41 = vld [vmem:[%s2995_s3 + $0x578] sm:$0xff]  ;;  %v622_v42 = vld [vmem:[%s2995_s3 + $0x560] sm:$0xff] }
  0x33   :  { %1364 = vmatprep.subr.bf16.mxu1 %v1363_v40  ;;  %1510 = vmatpush1.bf16.msra.mxu0 %v1509_v24  ;;  %v1389_v40 = vpack.c.bf16 %v496_v38, %v494_v37  ;;  %v624_v43 = vld [vmem:[%s2995_s3 + $0x570] sm:$0xff]  ;;  %v1515_v44 = vpack.c.bf16 %v625_v41, %v623_v39  ;;  %v501_v47 = vld [vmem:[%s2995_s3 + $0x198] sm:$0xff]  ;;  %v627_v51 = vld [vmem:[%s2995_s3 + $0x588] sm:$0xff] }
  0x34   :  { %1512 = vmatprep.subr.bf16.mxu0 %v1511_v19  ;;  %v500_v50 = vld [vmem:[%s2995_s3 + $0x190] sm:$0xff]  ;;  %v629_v53 = vld [vmem:[%s2995_s3 + $0x598] sm:$0xff]  ;;  %v626_v54 = vld [vmem:[%s2995_s3 + $0x580] sm:$0xff] }
  0x35   :  { %v628_v55 = vld [vmem:[%s2995_s3 + $0x590] sm:$0xff]  ;;  %v503_v58 = vld [vmem:[%s2995_s3 + $0x1a8] sm:$0xff]  ;;  %v505_v59 = vld [vmem:[%s2995_s3 + $0x1b8] sm:$0xff] }
  0x36   :  { %1366 = vmatpush1.bf16.msra.mxu1 %v1365_v45  ;;  %v1517_v45 = vpack.c.bf16 %v624_v43, %v622_v42  ;;  %v1521_v57 = vpack.c.bf16 %v628_v55, %v626_v54  ;;  %v1395_v60 = vpack.c.bf16 %v505_v59, %v503_v58  ;;  %v502_v61 = vld [vmem:[%s2995_s3 + $0x1a0] sm:$0xff]  ;;  %v504_v62 = vld [vmem:[%s2995_s3 + $0x1b0] sm:$0xff]  ;;  %v631_v63 = vld [vmem:[%s2995_s3 + $0x5a8] sm:$0xff] }
  0x37   :  { %1368 = vmatprep.subr.bf16.mxu1 %v1367_v46  ;;  %1514 = vmatpush1.bf16.msra.mxu0 %v1513_v33  ;;  %v499_v46 = vld [vmem:[%s2995_s3 + $0x188] sm:$0xff]  ;;  %v633_v1 = vld [vmem:[%s2995_s3 + $0x5b8] sm:$0xff]  ;;  %v630_v2 = vld [vmem:[%s2995_s3 + $0x5a0] sm:$0xff] }
  0x38   :  { %1516 = vmatprep.subr.bf16.mxu0 %v1515_v44  ;;  %v1391_v48 = vpack.c.bf16 %v501_v47, %v499_v46  ;;  %v632_v3 = vld [vmem:[%s2995_s3 + $0x5b0] sm:$0xff]  ;;  %v507_v7 = vld [vmem:[%s2995_s3 + $0x1c8] sm:$0xff]  ;;  %v509_v8 = vld [vmem:[%s2995_s3 + $0x1d8] sm:$0xff] }
  0x39   :  { %v1525_v6 = vpack.c.bf16 %v632_v3, %v630_v2  ;;  %v1399_v9 = vpack.c.bf16 %v509_v8, %v507_v7  ;;  %v506_v10 = vld [vmem:[%s2995_s3 + $0x1c0] sm:$0xff]  ;;  %v508_v11 = vld [vmem:[%s2995_s3 + $0x1d0] sm:$0xff]  ;;  %v635_v12 = vld [vmem:[%s2995_s3 + $0x5c8] sm:$0xff] }
  0x3a   :  { %1370 = vmatpush1.bf16.msra.mxu1 %v1369_v49  ;;  %v498_v49 = vld [vmem:[%s2995_s3 + $0x180] sm:$0xff]  ;;  %v637_v14 = vld [vmem:[%s2995_s3 + $0x5d8] sm:$0xff]  ;;  %v636_v17 = vld [vmem:[%s2995_s3 + $0x5d0] sm:$0xff] }
  0x3b   :  { %1372 = vmatprep.subr.bf16.mxu1 %v1371_v52  ;;  %1518 = vmatpush1.bf16.msra.mxu0 %v1517_v45  ;;  %v1393_v52 = vpack.c.bf16 %v500_v50, %v498_v49  ;;  %v634_v16 = vld [vmem:[%s2995_s3 + $0x5c0] sm:$0xff]  ;;  %v511_v21 = vld [vmem:[%s2995_s3 + $0x1e8] sm:$0xff]  ;;  %v513_v22 = vld [vmem:[%s2995_s3 + $0x1f8] sm:$0xff] }
  0x3c   :  { %v1529_v20 = vpack.c.bf16 %v636_v17, %v634_v16  ;;  %v1403_v23 = vpack.c.bf16 %v513_v22, %v511_v21  ;;  %v510_v24 = vld [vmem:[%s2995_s3 + $0x1e0] sm:$0xff]  ;;  %v512_v25 = vld [vmem:[%s2995_s3 + $0x1f0] sm:$0xff]  ;;  %v639_v26 = vld [vmem:[%s2995_s3 + $0x5e8] sm:$0xff] }
  0x3d   :  { %v641_v15 = vld [vmem:[%s2995_s3 + $0x5f8] sm:$0xff]  ;;  %v638_v5 = vld [vmem:[%s2995_s3 + $0x5e0] sm:$0xff]  ;;  %v640_v28 = vld [vmem:[%s2995_s3 + $0x5f0] sm:$0xff] }
  0x3e   :  { %1374 = vmatpush1.bf16.msra.mxu1 %v1373_v56  ;;  %v1519_v56 = vpack.c.bf16 %v629_v53, %v627_v51  ;;  %v1533_v30 = vpack.c.bf16 %v640_v28, %v638_v5  ;;  %v515_v31 = vld [vmem:[%s2995_s3 + $0x208] sm:$0xff]  ;;  %v517_v32 = vld [vmem:[%s2995_s3 + $0x218] sm:$0xff]  ;;  %v516_v59 = vld [vmem:[%s2995_s3 + $0x210] sm:$0xff] }
  0x3f   :  { %1376 = vmatprep.subr.bf16.mxu1 %v1375_v0  ;;  %v1397_v0 = vpack.c.bf16 %v504_v62, %v502_v61  ;;  %v1407_v19 = vpack.c.bf16 %v517_v32, %v515_v31  ;;  %v643_v33 = vld [vmem:[%s2995_s3 + $0x608] sm:$0xff]  ;;  %v645_v34 = vld [vmem:[%s2995_s3 + $0x618] sm:$0xff]  ;;  %v2278_v61 = vld [vmem:[%s2995_s3 + $0x610] sm:$0xff] }
  0x40   :  { %1520 = vmatprep.subr.bf16.mxu0 %v1519_v56  ;;  %v1535_v35 = vpack.c.bf16 %v645_v34, %v643_v33  ;;  %v2289_v2 = vld [vmem:[%s2995_s3 + $0x220] sm:$0xff]  ;;  %v2294_v7 = vld [vmem:[%s2995_s3 + $0x230] sm:$0xff]  ;;  %v2299_v8 = vld [vmem:[%s2995_s3 + $0x628] sm:$0xff] }
  0x41   :  { %1522 = vmatpush1.bf16.msra.mxu0 %v1521_v57  ;;  %v514_v57 = vld [vmem:[%s2995_s3 + $0x200] sm:$0xff]  ;;  %v1413_v22 = vpack.c.bf16 %v2294_v7, %v2289_v2 }
  0x42   :  { %1378 = vmatpush1.bf16.msra.mxu1 %v1377_v4  ;;  %v1523_v4 = vpack.c.bf16 %v633_v1, %v631_v63  ;;  %v521_v1 = vld [vmem:[%s2995_s3 + $0x238] sm:$0xff]  ;;  %v526_v7 = vld [vmem:[%s2995_s3 + $0x260] sm:$0xff] }
  0x43   :  { %1380 = vmatprep.subr.bf16.mxu1 %v1379_v13  ;;  %v1401_v13 = vpack.c.bf16 %v508_v11, %v506_v10 }
  0x44   :  { %1524 = vmatprep.subr.bf16.mxu0 %v1523_v4 }
  0x45   :  { %1526 = vmatpush1.bf16.msra.mxu0 %v1525_v6 }
  0x46   :  { %1382 = vmatpush1.bf16.msra.mxu1 %v1381_v18  ;;  %v1527_v18 = vpack.c.bf16 %v637_v14, %v635_v12  ;;  %v1409_v12 = vpack.c.bf16 %v516_v59, %v514_v57  ;;  %v529_v59 = vld [vmem:[%s2995_s3 + $0x278] sm:$0xff] }
  0x47   :  { %1384 = vmatprep.subr.bf16.mxu1 %v1383_v27  ;;  %v1405_v27 = vpack.c.bf16 %v512_v25, %v510_v24 }
  0x48   :  { %1528 = vmatprep.subr.bf16.mxu0 %v1527_v18 }
  0x49   :  { %1530 = vmatpush1.bf16.msra.mxu0 %v1529_v20 }
  0x4a   :  { %1386 = vmatpush1.bf16.msra.mxu1 %v1385_v29  ;;  %v1531_v29 = vpack.c.bf16 %v641_v15, %v639_v26 }
  0x4b   :  { %1388 = vmatprep.subr.bf16.mxu1 %v1387_v36 }
  0x4c   :  { %1532 = vmatprep.subr.bf16.mxu0 %v1531_v29 }
  0x4d   :  { %1534 = vmatpush1.bf16.msra.mxu0 %v1533_v30 }
  0x4e   :  { %1390 = vmatpush1.bf16.msra.mxu1 %v1389_v40  ;;  %1536 = vmatprep.subr.bf16.mxu0 %v1535_v35 }
  0x4f   :  { %1392 = vmatprep.subr.bf16.mxu1 %v1391_v48 }
  0x52   :  { %1394 = vmatpush1.bf16.msra.mxu1 %v1393_v52 }
  0x53   :  { %1396 = vmatprep.subr.bf16.mxu1 %v1395_v60  ;;  %v2273_v60 = vld [vmem:[%s2995_s3 + $0x600] sm:$0xff] }
  0x54   :  { %v1537_v16 = vpack.c.bf16 %v2278_v61, %v2273_v60 }
  0x56   :  { %1398 = vmatpush1.bf16.msra.mxu1 %v1397_v0  ;;  %v519_v0 = vld [vmem:[%s2995_s3 + $0x228] sm:$0xff] }
  0x57   :  { %1400 = vmatprep.subr.bf16.mxu1 %v1399_v9  ;;  %v2304_v9 = vld [vmem:[%s2995_s3 + $0x638] sm:$0xff]  ;;  %v1411_v17 = vpack.c.bf16 %v521_v1, %v519_v0  ;;  %v652_v0 = vld [vmem:[%s2995_s3 + $0x650] sm:$0xff] }
  0x5a   :  { %1402 = vmatpush1.bf16.msra.mxu1 %v1401_v13 }
  0x5b   :  { %1404 = vmatprep.subr.bf16.mxu1 %v1403_v23  ;;  %v1539_v23 = vpack.c.bf16 %v2304_v9, %v2299_v8  ;;  %v528_v8 = vld [vmem:[%s2995_s3 + $0x270] sm:$0xff] }
  0x5e   :  { %1406 = vmatpush1.bf16.msra.mxu1 %v1405_v27 }
  0x5f   :  { %1408 = vmatprep.subr.bf16.mxu1 %v1407_v19 }
  0x84   :  { %v377_v56 = vpop.permute.xlu0 %376 }
  0x88   :  { %v382_v20 = vpop.permute.xlu0 %381 }
  0xdc   :  { %v118_v36 = vpop.f32.mrb[0].mxu1 }
  0xdd   :  { %v120_v37 = vpop.f32.mrb[1].mxu1 }
  0xe0   :  { %v124_v38 = vpop.f32.mrb[2].mxu1 }
  0xe1   :  { %v126_v39 = vpop.f32.mrb[3].mxu1 }
  0xe4   :  { %v195_v40 = vpop.f32.mrb[4].mxu1 }
  0xe5   :  { %v360_v41 = vmax.f32 %v118_v36, %v195_v40  ;;  %v197_v42 = vpop.f32.mrb[5].mxu1 }
  0xe6   :  { %v361_v43 = vmax.f32 %v120_v37, %v197_v42  ;;  %v523_v37 = vld [vmem:[%s2995_s3 + $0x248] sm:$0xff] }
  0xe8   :  { %v201_v44 = vpop.f32.mrb[6].mxu1 }
  0xe9   :  { %v362_v45 = vmax.f32 %v124_v38, %v201_v44  ;;  %v203_v46 = vpop.f32.mrb[7].mxu1  ;;  %v525_v38 = vld [vmem:[%s2995_s3 + $0x258] sm:$0xff]  ;;  %v648_v44 = vld [vmem:[%s2995_s3 + $0x630] sm:$0xff] }
  0xea   :  { %v363_v47 = vmax.f32 %v126_v39, %v203_v46  ;;  %v651_v46 = vld [vmem:[%s2995_s3 + $0x648] sm:$0xff] }
  0xec   :  { %v272_v48 = vpop.f32.mrb[8].mxu1 }
  0xed   :  { %v274_v49 = vpop.f32.mrb[9].mxu1 }
  0xf0   :  { %v278_v50 = vpop.f32.mrb[10].mxu1 }
  0xf1   :  { %v280_v51 = vpop.f32.mrb[11].mxu1 }
  0xf4   :  { %v349_v52 = vpop.f32.mrb[12].mxu1 }
  0xf5   :  { %v364_v53 = vmax.f32 %v272_v48, %v349_v52  ;;  %v351_v54 = vpop.f32.mrb[13].mxu1  ;;  %v1415_v52 = vpack.c.bf16 %v525_v38, %v523_v37  ;;  %v664_v37 = vld [vmem:[%s2995_s3 + $0x6b0] sm:$0xff] }
  0xf6   :  { %v365_v55 = vmax.f32 %v274_v49, %v351_v54  ;;  %v524_v54 = vld [vmem:[%s2995_s3 + $0x250] sm:$0xff] }
  0xf7   :  { %v368_v58 = vmax.f32 %v360_v41, %v364_v53  ;;  %v522_v53 = vld [vmem:[%s2995_s3 + $0x240] sm:$0xff] }
  0xf8   :  { %v369_v62 = vmax.f32 %v361_v43, %v365_v55  ;;  %v355_v63 = vpop.f32.mrb[14].mxu1  ;;  %v646_v43 = vld [vmem:[%s2995_s3 + $0x620] sm:$0xff]  ;;  %v1417_v2 = vpack.c.bf16 %v524_v54, %v522_v53 }
  0xf9   :  { %v384_v3 = vadd.f32 %v377_v56, %v368_v58  ;;  %v366_v4 = vmax.f32 %v278_v50, %v355_v63  ;;  %v357_v6 = vpop.f32.mrb[15].mxu1  ;;  %v1541_v57 = vpack.c.bf16 %v648_v44, %v646_v43  ;;  %v527_v58 = vld [vmem:[%s2995_s3 + $0x268] sm:$0xff]  ;;  %v650_v63 = vld [vmem:[%s2995_s3 + $0x640] sm:$0xff]  ;;  %v540_v43 = vld [vmem:[%s2995_s3 + $0x2d0] sm:$0xff] }
  0xfa   :  { %v385_v10 = vadd.f32 %v377_v56, %v369_v62  ;;  %v367_v11 = vmax.f32 %v280_v51, %v357_v6  ;;  %v1419_v6 = vpack.c.bf16 %v529_v59, %v527_v58  ;;  %v1545_v9 = vpack.c.bf16 %v652_v0, %v650_v63  ;;  %v542_v54 = vld [vmem:[%s2995_s3 + $0x2e0] sm:$0xff]  ;;  %v547_v58 = vld [vmem:[%s2995_s3 + $0x308] sm:$0xff]  ;;  %v549_v59 = vld [vmem:[%s2995_s3 + $0x318] sm:$0xff] }
  0xfb   :  { %v2306_v13 = vmax.f32 %v384_v3, 0.0  ;;  %v370_v14 = vmax.f32 %v362_v45, %v366_v4  ;;  %v655_v3 = vld [vmem:[%s2995_s3 + $0x668] sm:$0xff]  ;;  %v657_v4 = vld [vmem:[%s2995_s3 + $0x678] sm:$0xff]  ;;  %v670_v63 = vld [vmem:[%s2995_s3 + $0x6e0] sm:$0xff] }
  0xfc   :  { %v389_v18 = vmax.f32 %v385_v10, 0.0  ;;  %v371_v21 = vmax.f32 %v363_v47, %v367_v11  ;;  %v653_v47 = vld [vmem:[%s2995_s3 + $0x658] sm:$0xff]  ;;  %v531_v10 = vld [vmem:[%s2995_s3 + $0x288] sm:$0xff]  ;;  %v672_v0 = vld [vmem:[%s2995_s3 + $0x6f0] sm:$0xff] }
  0xfd   :  { %v386_v24 = vadd.f32 %v382_v20, %v370_v14  ;;  %v393_v25 = vrot.slane %v2306_v13, 1  ;;  %v401_v26 = vrot.slane %v2306_v13, 5  ;;  %v397_v27 = vrot.slane %v2306_v13, 3  ;;  %v533_v11 = vld [vmem:[%s2995_s3 + $0x298] sm:$0xff]  ;;  %v656_v14 = vld [vmem:[%s2995_s3 + $0x670] sm:$0xff] }
  0xfe   :  { %v387_v15 = vadd.f32 %v382_v20, %v371_v21  ;;  %v417_v5 = vrot.slane %v389_v18, 7  ;;  %v1288_v28 = vrot.slane %v389_v18, 12  ;;  %v1286_v29 = vrot.slane %v389_v18, 10  ;;  %v530_v21 = vld [vmem:[%s2995_s3 + $0x280] sm:$0xff] }
  0xff   :  { %v390_v30 = vmax.f32 %v386_v24, 0.0  ;;  %v441_v31 = vsel %vm439_vm1, %v393_v25, %v389_v18  ;;  %v399_v32 = vrot.slane %v2306_v13, 4  ;;  %v1287_v19 = vrot.slane %v389_v18, 11  ;;  %v535_v24 = vld [vmem:[%s2995_s3 + $0x2a8] sm:$0xff]  ;;  %v537_v25 = vld [vmem:[%s2995_s3 + $0x2b8] sm:$0xff] }
 0x100   :  { %v391_v33 = vmax.f32 %v387_v15, 0.0  ;;  %846 = vmatprep.mubr.f32.mxu1 %v441_v31  ;;  %v440_v34 = vsel %vm439_vm1, %v2306_v13, %v417_v5  ;;  %v445_v35 = vsel %vm439_vm1, %v401_v26, %v1288_v28  ;;  %v443_v36 = vsel %vm439_vm1, %v397_v27, %v1286_v29  ;;  %v658_v27 = vld [vmem:[%s2995_s3 + $0x680] sm:$0xff]  ;;  %v660_v15 = vld [vmem:[%s2995_s3 + $0x690] sm:$0xff]  ;;  %v663_v28 = vld [vmem:[%s2995_s3 + $0x6a8] sm:$0xff] }
 0x101   :  { %v408_v39 = vrot.slane %v390_v30, 1  ;;  %847 = vmatmul.mubr.f32.vlgmr.msra.gmra.mrb[16].mxu1 %v440_v34  ;;  %988 = vmatprep.mubr.f32.mxu0 %v445_v35  ;;  %v444_v40 = vsel %vm439_vm1, %v399_v32, %v1287_v19  ;;  %v405_v41 = vrot.slane %v2306_v13, 7  ;;  %v426_v42 = vrot.slane %v417_v5, 7  ;;  %v665_v29 = vld [vmem:[%s2995_s3 + $0x6b8] sm:$0xff]  ;;  %v534_v31 = vld [vmem:[%s2995_s3 + $0x2a0] sm:$0xff]  ;;  %v536_v32 = vld [vmem:[%s2995_s3 + $0x2b0] sm:$0xff] }
 0x102   :  { %v427_v45 = vrot.slane %v391_v33, 7  ;;  %1410 = vmatpush1.bf16.msra.mxu1 %v1409_v12  ;;  %917 = vmatprep.mubr.f32.mxu1 %v443_v36  ;;  %v395_v48 = vrot.slane %v2306_v13, 2  ;;  %v1285_v49 = vrot.slane %v389_v18, 9  ;;  %v403_v50 = vrot.slane %v2306_v13, 6  ;;  %v654_v13 = vld [vmem:[%s2995_s3 + $0x660] sm:$0xff]  ;;  %v541_v34 = vld [vmem:[%s2995_s3 + $0x2d8] sm:$0xff] }
 0x103   :  { %989 = vmatmul.mubr.f32.vlgmr.msra.gmra.mrb[0].mxu0 %v444_v40  ;;  %v447_v51 = vsel %vm439_vm1, %v405_v41, %v426_v42  ;;  %1412 = vmatprep.subr.bf16.mxu1 %v1411_v17  ;;  %v1289_v55 = vrot.slane %v389_v18, 13  ;;  %v2353_v56 = vsel %vm439_vm1, %v408_v39, %v391_v33  ;;  %v1543_v62 = vpack.c.bf16 %v653_v47, %v651_v46  ;;  %v659_v17 = vld [vmem:[%s2995_s3 + $0x688] sm:$0xff]  ;;  %v661_v18 = vld [vmem:[%s2995_s3 + $0x698] sm:$0xff]  ;;  %v662_v36 = vld [vmem:[%s2995_s3 + $0x6a0] sm:$0xff] }
 0x104   :  { %1538 = vmatpush1.bf16.msra.mxu0 %v1537_v16  ;;  %1059 = vmatprep.mubr.f32.mxu0 %v447_v51  ;;  %v2362_v60 = vsel %vm439_vm1, %v395_v48, %v1285_v49  ;;  %v2365_v61 = vsel %vm439_vm1, %v390_v30, %v427_v45  ;;  %v1547_v12 = vpack.c.bf16 %v657_v4, %v655_v3  ;;  %v539_v33 = vld [vmem:[%s2995_s3 + $0x2c8] sm:$0xff]  ;;  %v669_v40 = vld [vmem:[%s2995_s3 + $0x6d8] sm:$0xff]  ;;  %v538_v42 = vld [vmem:[%s2995_s3 + $0x2c0] sm:$0xff] }
 0x105   :  { %1540 = vmatprep.subr.bf16.mxu0 %v1539_v23  ;;  %v2374_v1 = vsel %vm439_vm1, %v403_v50, %v1289_v55  ;;  %v1421_v16 = vpack.c.bf16 %v528_v8, %v526_v7  ;;  %v1423_v20 = vpack.c.bf16 %v533_v11, %v531_v10  ;;  %v1549_v23 = vpack.c.bf16 %v656_v14, %v654_v13  ;;  %v667_v39 = vld [vmem:[%s2995_s3 + $0x6c8] sm:$0xff]  ;;  %v545_v46 = vld [vmem:[%s2995_s3 + $0x2f8] sm:$0xff]  ;;  %v666_v48 = vld [vmem:[%s2995_s3 + $0x6c0] sm:$0xff] }
 0x106   :  { %1414 = vmatpush1.bf16.msra.mxu1 %v1413_v22  ;;  %v532_v22 = vld [vmem:[%s2995_s3 + $0x290] sm:$0xff]  ;;  %v1551_v26 = vpack.c.bf16 %v661_v18, %v659_v17  ;;  %v1427_v30 = vpack.c.bf16 %v537_v25, %v535_v24  ;;  %v1553_v19 = vpack.c.bf16 %v660_v15, %v658_v27  ;;  %v1555_v35 = vpack.c.bf16 %v665_v29, %v663_v28  ;;  %v543_v45 = vld [vmem:[%s2995_s3 + $0x2e8] sm:$0xff]  ;;  %v677_v4 = vld [vmem:[%s2995_s3 + $0x718] sm:$0xff] }
 0x107   :  { %1416 = vmatprep.subr.bf16.mxu1 %v1415_v52  ;;  %v1425_v5 = vpack.c.bf16 %v532_v22, %v530_v21  ;;  %v1429_v38 = vpack.c.bf16 %v536_v32, %v534_v31  ;;  %v1431_v41 = vpack.c.bf16 %v541_v34, %v539_v33  ;;  %v1557_v44 = vpack.c.bf16 %v664_v37, %v662_v36  ;;  %v668_v49 = vld [vmem:[%s2995_s3 + $0x6d0] sm:$0xff]  ;;  %v671_v51 = vld [vmem:[%s2995_s3 + $0x6e8] sm:$0xff]  ;;  %v673_v52 = vld [vmem:[%s2995_s3 + $0x6f8] sm:$0xff] }
 0x108   :  { %1542 = vmatpush1.bf16.msra.mxu0 %v1541_v57  ;;  %v1559_v47 = vpack.c.bf16 %v669_v40, %v667_v39  ;;  %v1433_v50 = vpack.c.bf16 %v540_v43, %v538_v42  ;;  %v1435_v53 = vpack.c.bf16 %v545_v46, %v543_v45  ;;  %v544_v55 = vld [vmem:[%s2995_s3 + $0x2f0] sm:$0xff]  ;;  %v1561_v57 = vpack.c.bf16 %v668_v49, %v666_v48  ;;  %v675_v3 = vld [vmem:[%s2995_s3 + $0x708] sm:$0xff]  ;;  %v546_v7 = vld [vmem:[%s2995_s3 + $0x300] sm:$0xff] }
 0x109   :  { %1544 = vmatprep.subr.bf16.mxu0 %v1543_v62  ;;  %v1563_v62 = vpack.c.bf16 %v673_v52, %v671_v51  ;;  %v548_v8 = vld [vmem:[%s2995_s3 + $0x310] sm:$0xff]  ;;  %v551_v10 = vld [vmem:[%s2995_s3 + $0x328] sm:$0xff]  ;;  %v553_v11 = vld [vmem:[%s2995_s3 + $0x338] sm:$0xff] }
 0x10a   :  { %1418 = vmatpush1.bf16.msra.mxu1 %v1417_v2  ;;  %v1437_v2 = vpack.c.bf16 %v544_v55, %v542_v54  ;;  %v674_v13 = vld [vmem:[%s2995_s3 + $0x700] sm:$0xff]  ;;  %v676_v14 = vld [vmem:[%s2995_s3 + $0x710] sm:$0xff]  ;;  %v679_v17 = vld [vmem:[%s2995_s3 + $0x728] sm:$0xff] }
 0x10b   :  { %1420 = vmatprep.subr.bf16.mxu1 %v1419_v6  ;;  %v1439_v6 = vpack.c.bf16 %v549_v59, %v547_v58  ;;  %v681_v18 = vld [vmem:[%s2995_s3 + $0x738] sm:$0xff]  ;;  %v550_v21 = vld [vmem:[%s2995_s3 + $0x320] sm:$0xff]  ;;  %v552_v22 = vld [vmem:[%s2995_s3 + $0x330] sm:$0xff] }
 0x10c   :  { %1546 = vmatpush1.bf16.msra.mxu0 %v1545_v9  ;;  %v1565_v9 = vpack.c.bf16 %v672_v0, %v670_v63  ;;  %v555_v24 = vld [vmem:[%s2995_s3 + $0x348] sm:$0xff]  ;;  %v557_v25 = vld [vmem:[%s2995_s3 + $0x358] sm:$0xff]  ;;  %v678_v27 = vld [vmem:[%s2995_s3 + $0x720] sm:$0xff] }
 0x10d   :  { %1548 = vmatprep.subr.bf16.mxu0 %v1547_v12  ;;  %v1567_v12 = vpack.c.bf16 %v677_v4, %v675_v3  ;;  %v680_v15 = vld [vmem:[%s2995_s3 + $0x730] sm:$0xff]  ;;  %v683_v28 = vld [vmem:[%s2995_s3 + $0x748] sm:$0xff]  ;;  %v685_v29 = vld [vmem:[%s2995_s3 + $0x758] sm:$0xff] }
 0x10e   :  { %1422 = vmatpush1.bf16.msra.mxu1 %v1421_v16  ;;  %v1441_v16 = vpack.c.bf16 %v548_v8, %v546_v7  ;;  %v554_v31 = vld [vmem:[%s2995_s3 + $0x340] sm:$0xff]  ;;  %v556_v32 = vld [vmem:[%s2995_s3 + $0x350] sm:$0xff]  ;;  %v559_v33 = vld [vmem:[%s2995_s3 + $0x368] sm:$0xff] }
 0x10f   :  { %1424 = vmatprep.subr.bf16.mxu1 %v1423_v20  ;;  %v1443_v20 = vpack.c.bf16 %v553_v11, %v551_v10  ;;  %v561_v34 = vld [vmem:[%s2995_s3 + $0x378] sm:$0xff]  ;;  %v682_v36 = vld [vmem:[%s2995_s3 + $0x740] sm:$0xff]  ;;  %v684_v37 = vld [vmem:[%s2995_s3 + $0x750] sm:$0xff] }
 0x110   :  { %1550 = vmatpush1.bf16.msra.mxu0 %v1549_v23  ;;  %v1569_v23 = vpack.c.bf16 %v676_v14, %v674_v13  ;;  %v687_v39 = vld [vmem:[%s2995_s3 + $0x768] sm:$0xff]  ;;  %v689_v40 = vld [vmem:[%s2995_s3 + $0x778] sm:$0xff]  ;;  %v558_v42 = vld [vmem:[%s2995_s3 + $0x360] sm:$0xff] }
 0x111   :  { %1552 = vmatprep.subr.bf16.mxu0 %v1551_v26  ;;  %v1571_v26 = vpack.c.bf16 %v681_v18, %v679_v17  ;;  %v560_v43 = vld [vmem:[%s2995_s3 + $0x370] sm:$0xff]  ;;  %v563_v45 = vld [vmem:[%s2995_s3 + $0x388] sm:$0xff]  ;;  %v565_v46 = vld [vmem:[%s2995_s3 + $0x398] sm:$0xff] }
 0x112   :  { %1426 = vmatpush1.bf16.msra.mxu1 %v1425_v5  ;;  %v1445_v5 = vpack.c.bf16 %v552_v22, %v550_v21  ;;  %v686_v48 = vld [vmem:[%s2995_s3 + $0x760] sm:$0xff]  ;;  %v688_v49 = vld [vmem:[%s2995_s3 + $0x770] sm:$0xff]  ;;  %v691_v51 = vld [vmem:[%s2995_s3 + $0x788] sm:$0xff] }
 0x113   :  { %1428 = vmatprep.subr.bf16.mxu1 %v1427_v30  ;;  %v1447_v30 = vpack.c.bf16 %v557_v25, %v555_v24  ;;  %v693_v52 = vld [vmem:[%s2995_s3 + $0x798] sm:$0xff]  ;;  %v562_v54 = vld [vmem:[%s2995_s3 + $0x380] sm:$0xff]  ;;  %v564_v55 = vld [vmem:[%s2995_s3 + $0x390] sm:$0xff] }
 0x114   :  { %1554 = vmatpush1.bf16.msra.mxu0 %v1553_v19  ;;  %v1573_v19 = vpack.c.bf16 %v680_v15, %v678_v27  ;;  %v567_v58 = vld [vmem:[%s2995_s3 + $0x3a8] sm:$0xff]  ;;  %v569_v59 = vld [vmem:[%s2995_s3 + $0x3b8] sm:$0xff]  ;;  %v690_v63 = vld [vmem:[%s2995_s3 + $0x780] sm:$0xff] }
 0x115   :  { %1556 = vmatprep.subr.bf16.mxu0 %v1555_v35  ;;  %v1575_v35 = vpack.c.bf16 %v685_v29, %v683_v28  ;;  %v692_v0 = vld [vmem:[%s2995_s3 + $0x790] sm:$0xff]  ;;  %v695_v3 = vld [vmem:[%s2995_s3 + $0x7a8] sm:$0xff]  ;;  %v697_v4 = vld [vmem:[%s2995_s3 + $0x7b8] sm:$0xff] }
 0x116   :  { %1430 = vmatpush1.bf16.msra.mxu1 %v1429_v38  ;;  %v1449_v38 = vpack.c.bf16 %v556_v32, %v554_v31  ;;  %v566_v7 = vld [vmem:[%s2995_s3 + $0x3a0] sm:$0xff]  ;;  %v568_v8 = vld [vmem:[%s2995_s3 + $0x3b0] sm:$0xff]  ;;  %v571_v10 = vld [vmem:[%s2995_s3 + $0x3c8] sm:$0xff] }
 0x117   :  { %1432 = vmatprep.subr.bf16.mxu1 %v1431_v41  ;;  %v1451_v41 = vpack.c.bf16 %v561_v34, %v559_v33  ;;  %v573_v11 = vld [vmem:[%s2995_s3 + $0x3d8] sm:$0xff]  ;;  %v694_v13 = vld [vmem:[%s2995_s3 + $0x7a0] sm:$0xff]  ;;  %v696_v14 = vld [vmem:[%s2995_s3 + $0x7b0] sm:$0xff] }
 0x118   :  { %1558 = vmatpush1.bf16.msra.mxu0 %v1557_v44  ;;  %v1577_v44 = vpack.c.bf16 %v684_v37, %v682_v36  ;;  %v699_v17 = vld [vmem:[%s2995_s3 + $0x7c8] sm:$0xff]  ;;  %v701_v18 = vld [vmem:[%s2995_s3 + $0x7d8] sm:$0xff]  ;;  %v570_v21 = vld [vmem:[%s2995_s3 + $0x3c0] sm:$0xff] }
 0x119   :  { %1560 = vmatprep.subr.bf16.mxu0 %v1559_v47  ;;  %v1579_v47 = vpack.c.bf16 %v689_v40, %v687_v39  ;;  %v572_v22 = vld [vmem:[%s2995_s3 + $0x3d0] sm:$0xff]  ;;  %v575_v24 = vld [vmem:[%s2995_s3 + $0x3e8] sm:$0xff]  ;;  %v577_v25 = vld [vmem:[%s2995_s3 + $0x3f8] sm:$0xff] }
 0x11a   :  { %1434 = vmatpush1.bf16.msra.mxu1 %v1433_v50  ;;  %v1453_v50 = vpack.c.bf16 %v560_v43, %v558_v42  ;;  %v698_v27 = vld [vmem:[%s2995_s3 + $0x7c0] sm:$0xff]  ;;  %v700_v15 = vld [vmem:[%s2995_s3 + $0x7d0] sm:$0xff]  ;;  %v703_v28 = vld [vmem:[%s2995_s3 + $0x7e8] sm:$0xff] }
 0x11b   :  { %1436 = vmatprep.subr.bf16.mxu1 %v1435_v53  ;;  %v1455_v53 = vpack.c.bf16 %v565_v46, %v563_v45  ;;  %v705_v29 = vld [vmem:[%s2995_s3 + $0x7f8] sm:$0xff]  ;;  %v574_v31 = vld [vmem:[%s2995_s3 + $0x3e0] sm:$0xff]  ;;  %v576_v32 = vld [vmem:[%s2995_s3 + $0x3f0] sm:$0xff] }
 0x11c   :  { %1562 = vmatpush1.bf16.msra.mxu0 %v1561_v57  ;;  %v1581_v57 = vpack.c.bf16 %v688_v49, %v686_v48  ;;  %v1595_v33 = vpack.c.bf16 %v705_v29, %v703_v28  ;;  %v702_v34 = vld [vmem:[%s2995_s3 + $0x7e0] sm:$0xff]  ;;  %v1469_v36 = vpack.c.bf16 %v576_v32, %v574_v31  ;;  %v707_v37 = vld [vmem:[%s2995_s3 + $0x808] sm:$0xff]  ;;  %v708_v42 = vld [vmem:[%s2995_s3 + $0x810] sm:$0xff] }
 0x11d   :  { %1564 = vmatprep.subr.bf16.mxu0 %v1563_v62  ;;  %v1583_v62 = vpack.c.bf16 %v693_v52, %v691_v51  ;;  %v711_v43 = vld [vmem:[%s2995_s3 + $0x828] sm:$0xff]  ;;  %v712_v48 = vld [vmem:[%s2995_s3 + $0x830] sm:$0xff]  ;;  %v714_v52 = vld [vmem:[%s2995_s3 + $0x840] sm:$0xff] }
 0x11e   :  { %1438 = vmatpush1.bf16.msra.mxu1 %v1437_v2  ;;  %v1457_v2 = vpack.c.bf16 %v564_v55, %v562_v54  ;;  %v715_v49 = vld [vmem:[%s2995_s3 + $0x848] sm:$0xff]  ;;  %v740_v28 = vld [vmem:[%s2995_s3 + $0x910] sm:$0xff] }
 0x11f   :  { %1440 = vmatprep.subr.bf16.mxu1 %v1439_v6  ;;  %v1459_v6 = vpack.c.bf16 %v569_v59, %v567_v58  ;;  %v719_v54 = vld [vmem:[%s2995_s3 + $0x868] sm:$0xff]  ;;  %v720_v58 = vld [vmem:[%s2995_s3 + $0x870] sm:$0xff] }
 0x120   :  { %1566 = vmatpush1.bf16.msra.mxu0 %v1565_v9  ;;  %v1585_v9 = vpack.c.bf16 %v692_v0, %v690_v63  ;;  %v723_v59 = vld [vmem:[%s2995_s3 + $0x888] sm:$0xff] }
 0x121   :  { %1568 = vmatprep.subr.bf16.mxu0 %v1567_v12  ;;  %v1587_v12 = vpack.c.bf16 %v697_v4, %v695_v3  ;;  %v724_v3 = vld [vmem:[%s2995_s3 + $0x890] sm:$0xff]  ;;  %v727_v4 = vld [vmem:[%s2995_s3 + $0x8a8] sm:$0xff] }
 0x122   :  { %1442 = vmatpush1.bf16.msra.mxu1 %v1441_v16  ;;  %v1461_v16 = vpack.c.bf16 %v568_v8, %v566_v7  ;;  %v743_v29 = vld [vmem:[%s2995_s3 + $0x928] sm:$0xff] }
 0x123   :  { %1444 = vmatprep.subr.bf16.mxu1 %v1443_v20  ;;  %v1463_v20 = vpack.c.bf16 %v573_v11, %v571_v10  ;;  %v728_v10 = vld [vmem:[%s2995_s3 + $0x8b0] sm:$0xff]  ;;  %v731_v11 = vld [vmem:[%s2995_s3 + $0x8c8] sm:$0xff] }
 0x124   :  { %1570 = vmatpush1.bf16.msra.mxu0 %v1569_v23  ;;  %v1589_v23 = vpack.c.bf16 %v696_v14, %v694_v13 }
 0x125   :  { %1572 = vmatprep.subr.bf16.mxu0 %v1571_v26  ;;  %v1591_v26 = vpack.c.bf16 %v701_v18, %v699_v17  ;;  %v732_v17 = vld [vmem:[%s2995_s3 + $0x8d0] sm:$0xff]  ;;  %v735_v18 = vld [vmem:[%s2995_s3 + $0x8e8] sm:$0xff] }
 0x126   :  { %1446 = vmatpush1.bf16.msra.mxu1 %v1445_v5  ;;  %v1465_v5 = vpack.c.bf16 %v572_v22, %v570_v21 }
 0x127   :  { %1448 = vmatprep.subr.bf16.mxu1 %v1447_v30  ;;  %v1467_v30 = vpack.c.bf16 %v577_v25, %v575_v24  ;;  %v736_v24 = vld [vmem:[%s2995_s3 + $0x8f0] sm:$0xff]  ;;  %v739_v25 = vld [vmem:[%s2995_s3 + $0x908] sm:$0xff] }
 0x128   :  { %1574 = vmatpush1.bf16.msra.mxu0 %v1573_v19  ;;  %v1593_v19 = vpack.c.bf16 %v700_v15, %v698_v27 }
 0x129   :  { %1576 = vmatprep.subr.bf16.mxu0 %v1575_v35  ;;  %v704_v35 = vld [vmem:[%s2995_s3 + $0x7f0] sm:$0xff] }
 0x12a   :  { %1450 = vmatpush1.bf16.msra.mxu1 %v1449_v38  ;;  %v709_v38 = vld [vmem:[%s2995_s3 + $0x818] sm:$0xff]  ;;  %v1597_v39 = vpack.c.bf16 %v704_v35, %v702_v34  ;;  %v747_v34 = vld [vmem:[%s2995_s3 + $0x948] sm:$0xff] }
 0x12b   :  { %1452 = vmatprep.subr.bf16.mxu1 %v1451_v41  ;;  %v1599_v40 = vpack.c.bf16 %v709_v38, %v707_v37  ;;  %v706_v41 = vld [vmem:[%s2995_s3 + $0x800] sm:$0xff]  ;;  %v749_v35 = vld [vmem:[%s2995_s3 + $0x958] sm:$0xff] }
 0x12c   :  { %1578 = vmatpush1.bf16.msra.mxu0 %v1577_v44  ;;  %v713_v44 = vld [vmem:[%s2995_s3 + $0x838] sm:$0xff]  ;;  %v1601_v45 = vpack.c.bf16 %v708_v42, %v706_v41  ;;  %v1639_v37 = vpack.c.bf16 %v749_v35, %v747_v34  ;;  %v746_v38 = vld [vmem:[%s2995_s3 + $0x940] sm:$0xff]  ;;  %v1148_v35 = vld [vmem:[%s2997_s5 + $0x48] sm:$0xff] }
 0x12d   :  { %1580 = vmatprep.subr.bf16.mxu0 %v1579_v47  ;;  %v1603_v46 = vpack.c.bf16 %v713_v44, %v711_v43  ;;  %v710_v47 = vld [vmem:[%s2995_s3 + $0x820] sm:$0xff]  ;;  %v753_v41 = vld [vmem:[%s2995_s3 + $0x978] sm:$0xff] }
 0x12e   :  { %1454 = vmatpush1.bf16.msra.mxu1 %v1453_v50  ;;  %v717_v50 = vld [vmem:[%s2995_s3 + $0x858] sm:$0xff]  ;;  %v750_v44 = vld [vmem:[%s2995_s3 + $0x960] sm:$0xff] }
 0x12f   :  { %1456 = vmatprep.subr.bf16.mxu1 %v1455_v53  ;;  %v1607_v51 = vpack.c.bf16 %v717_v50, %v715_v49  ;;  %v716_v53 = vld [vmem:[%s2995_s3 + $0x850] sm:$0xff]  ;;  %v754_v50 = vld [vmem:[%s2995_s3 + $0x980] sm:$0xff] }
 0x130   :  { %1582 = vmatpush1.bf16.msra.mxu0 %v1581_v57  ;;  %v718_v57 = vld [vmem:[%s2995_s3 + $0x860] sm:$0xff] }
 0x131   :  { %1584 = vmatprep.subr.bf16.mxu0 %v1583_v62  ;;  %v725_v62 = vld [vmem:[%s2995_s3 + $0x898] sm:$0xff]  ;;  %v1613_v63 = vpack.c.bf16 %v720_v58, %v718_v57  ;;  %v1147_v34 = vld [vmem:[%s2997_s5 + $0x40] sm:$0xff] }
 0x132   :  { %1458 = vmatpush1.bf16.msra.mxu1 %v1457_v2  ;;  %v1615_v0 = vpack.c.bf16 %v725_v62, %v723_v59  ;;  %v722_v2 = vld [vmem:[%s2995_s3 + $0x880] sm:$0xff]  ;;  %v765_v57 = vld [vmem:[%s2995_s3 + $0x9d8] sm:$0xff] }
 0x133   :  { %1460 = vmatprep.subr.bf16.mxu1 %v1459_v6  ;;  %v729_v6 = vld [vmem:[%s2995_s3 + $0x8b8] sm:$0xff]  ;;  %v1617_v7 = vpack.c.bf16 %v724_v3, %v722_v2  ;;  %v762_v62 = vld [vmem:[%s2995_s3 + $0x9c0] sm:$0xff] }
 0x134   :  { %1586 = vmatpush1.bf16.msra.mxu0 %v1585_v9  ;;  %v1619_v8 = vpack.c.bf16 %v729_v6, %v727_v4  ;;  %v726_v9 = vld [vmem:[%s2995_s3 + $0x8a0] sm:$0xff]  ;;  %v769_v2 = vld [vmem:[%s2995_s3 + $0x9f8] sm:$0xff] }
 0x135   :  { %1588 = vmatprep.subr.bf16.mxu0 %v1587_v12  ;;  %v733_v12 = vld [vmem:[%s2995_s3 + $0x8d8] sm:$0xff]  ;;  %v1621_v13 = vpack.c.bf16 %v728_v10, %v726_v9  ;;  %v766_v6 = vld [vmem:[%s2995_s3 + $0x9e0] sm:$0xff]  ;;  %v1156_v10 = vld [vmem:[%s2997_s5 + $0x88] sm:$0xff] }
 0x136   :  { %1462 = vmatpush1.bf16.msra.mxu1 %v1461_v16  ;;  %v1623_v14 = vpack.c.bf16 %v733_v12, %v731_v11  ;;  %v730_v16 = vld [vmem:[%s2995_s3 + $0x8c0] sm:$0xff] }
 0x137   :  { %1464 = vmatprep.subr.bf16.mxu1 %v1463_v20  ;;  %v737_v20 = vld [vmem:[%s2995_s3 + $0x8f8] sm:$0xff]  ;;  %v1625_v21 = vpack.c.bf16 %v732_v17, %v730_v16  ;;  %v1155_v9 = vld [vmem:[%s2997_s5 + $0x80] sm:$0xff] }
 0x138   :  { %1590 = vmatpush1.bf16.msra.mxu0 %v1589_v23  ;;  %v1627_v22 = vpack.c.bf16 %v737_v20, %v735_v18  ;;  %v734_v23 = vld [vmem:[%s2995_s3 + $0x8e0] sm:$0xff]  ;;  %v1663_v12 = vpack.c.bf16 %v1156_v10, %v1155_v9  ;;  %v1141_v18 = vld [vmem:[%s2997_s5 + $0x10] sm:$0xff]  ;;  %v1142_v20 = vld [vmem:[%s2997_s5 + $0x18] sm:$0xff] }
 0x139   :  { %1592 = vmatprep.subr.bf16.mxu0 %v1591_v26  ;;  %v741_v26 = vld [vmem:[%s2995_s3 + $0x918] sm:$0xff]  ;;  %v1629_v27 = vpack.c.bf16 %v736_v24, %v734_v23  ;;  %v1139_v11 = vld [vmem:[%s2997_s5] sm:$0xff]  ;;  %v1669_v23 = vpack.c.bf16 %v1142_v20, %v1141_v18 }
 0x13a   :  { %1466 = vmatpush1.bf16.msra.mxu1 %v1465_v5  ;;  %v1631_v15 = vpack.c.bf16 %v741_v26, %v739_v25  ;;  %v738_v5 = vld [vmem:[%s2995_s3 + $0x900] sm:$0xff]  ;;  %v1144_v26 = vld [vmem:[%s2997_s5 + $0x28] sm:$0xff] }
 0x13b   :  { %1468 = vmatprep.subr.bf16.mxu1 %v1467_v30  ;;  %v745_v30 = vld [vmem:[%s2995_s3 + $0x938] sm:$0xff]  ;;  %v1633_v31 = vpack.c.bf16 %v740_v28, %v738_v5  ;;  %v1143_v25 = vld [vmem:[%s2997_s5 + $0x20] sm:$0xff] }
 0x13c   :  { %1594 = vmatpush1.bf16.msra.mxu0 %v1593_v19  ;;  %v1635_v32 = vpack.c.bf16 %v745_v30, %v743_v29  ;;  %v742_v19 = vld [vmem:[%s2995_s3 + $0x920] sm:$0xff]  ;;  %v1673_v5 = vpack.c.bf16 %v1144_v26, %v1143_v25  ;;  %v1145_v29 = vld [vmem:[%s2997_s5 + $0x30] sm:$0xff]  ;;  %v1146_v30 = vld [vmem:[%s2997_s5 + $0x38] sm:$0xff] }
 0x13d   :  { %1596 = vmatprep.subr.bf16.mxu0 %v1595_v33  ;;  %v744_v33 = vld [vmem:[%s2995_s3 + $0x930] sm:$0xff] }
 0x13e   :  { %1470 = vmatpush1.bf16.msra.mxu1 %v1469_v36  ;;  %v1637_v36 = vpack.c.bf16 %v744_v33, %v742_v19  ;;  %v1677_v19 = vpack.c.bf16 %v1146_v30, %v1145_v29 }
 0x13f   :  { %1664 = vmatprep.subr.bf16.mxu1 %v1663_v12  ;;  %v1291_v12 = vld [vmem:[%s2998_s6] ss:$0 sm:$0xff] }
 0x140   :  { %1598 = vmatpush1.bf16.msra.mxu0 %v1597_v39  ;;  %v748_v39 = vld [vmem:[%s2995_s3 + $0x950] sm:$0xff] }
 0x141   :  { %918 = vmatmul.mubr.f32.vlgmr.msra.gmra.mrb[16].mxu1 %v2362_v60  ;;  %1600 = vmatprep.subr.bf16.mxu0 %v1599_v40  ;;  %v1605_v60 = vpack.c.bf16 %v712_v48, %v710_v47  ;;  %v751_v40 = vld [vmem:[%s2995_s3 + $0x968] sm:$0xff]  ;;  %v1641_v42 = vpack.c.bf16 %v748_v39, %v746_v38  ;;  %v757_v47 = vld [vmem:[%s2995_s3 + $0x998] sm:$0xff]  ;;  %v1681_v38 = vpack.c.bf16 %v1148_v35, %v1147_v34 }
 0x142   :  { %v1643_v43 = vpack.c.bf16 %v753_v41, %v751_v40  ;;  %v1149_v40 = vld [vmem:[%s2997_s5 + $0x50] sm:$0xff]  ;;  %v1150_v41 = vld [vmem:[%s2997_s5 + $0x58] sm:$0xff] }
 0x143   :  { %1060 = vmatmul.mubr.f32.vlgmr.msra.gmra.mrb[0].mxu0 %v2374_v1  ;;  %v721_v1 = vld [vmem:[%s2995_s3 + $0x878] sm:$0xff] }
 0x144   :  { %1602 = vmatpush1.bf16.msra.mxu0 %v1601_v45  ;;  %1130 = vmatprep.mubr.f32.mxu0 %v2353_v56  ;;  %v1609_v56 = vpack.c.bf16 %v716_v53, %v714_v52  ;;  %v1611_v55 = vpack.c.bf16 %v721_v1, %v719_v54  ;;  %v752_v45 = vld [vmem:[%s2995_s3 + $0x970] sm:$0xff]  ;;  %v761_v52 = vld [vmem:[%s2995_s3 + $0x9b8] sm:$0xff]  ;;  %v758_v1 = vld [vmem:[%s2995_s3 + $0x9a0] sm:$0xff] }
 0x145   :  { %1604 = vmatprep.subr.bf16.mxu0 %v1603_v46  ;;  %v755_v46 = vld [vmem:[%s2995_s3 + $0x988] sm:$0xff]  ;;  %v1645_v48 = vpack.c.bf16 %v752_v45, %v750_v44  ;;  %v1685_v44 = vpack.c.bf16 %v1150_v41, %v1149_v40 }
 0x146   :  { %v1647_v49 = vpack.c.bf16 %v757_v47, %v755_v46  ;;  %v1151_v46 = vld [vmem:[%s2997_s5 + $0x60] sm:$0xff]  ;;  %v1152_v47 = vld [vmem:[%s2997_s5 + $0x68] sm:$0xff] }
 0x148   :  { %1606 = vmatpush1.bf16.msra.mxu0 %v1605_v60  ;;  %v756_v60 = vld [vmem:[%s2995_s3 + $0x990] sm:$0xff] }
 0x149   :  { %1608 = vmatprep.subr.bf16.mxu0 %v1607_v51  ;;  %v759_v51 = vld [vmem:[%s2995_s3 + $0x9a8] sm:$0xff]  ;;  %v1649_v53 = vpack.c.bf16 %v756_v60, %v754_v50  ;;  %v1170_v50 = vld [vmem:[%s2997_s5 + $0xf8] sm:$0xff] }
 0x14a   :  { %v1651_v54 = vpack.c.bf16 %v761_v52, %v759_v51  ;;  %v1153_v51 = vld [vmem:[%s2997_s5 + $0x70] sm:$0xff]  ;;  %v1154_v52 = vld [vmem:[%s2997_s5 + $0x78] sm:$0xff] }
 0x14c   :  { %1610 = vmatpush1.bf16.msra.mxu0 %v1609_v56  ;;  %v760_v56 = vld [vmem:[%s2995_s3 + $0x9b0] sm:$0xff] }
 0x14d   :  { %1612 = vmatprep.subr.bf16.mxu0 %v1611_v55  ;;  %v763_v55 = vld [vmem:[%s2995_s3 + $0x9c8] sm:$0xff]  ;;  %v1653_v58 = vpack.c.bf16 %v760_v56, %v758_v1  ;;  %v772_v56 = vlaneseq }
 0x14e   :  { %v1655_v59 = vpack.c.bf16 %v765_v57, %v763_v55 }
 0x14f   :  { %v773_v55 = vshrl.u32 %v772_v56, 7 }
 0x150   :  { %1614 = vmatpush1.bf16.msra.mxu0 %v1613_v63  ;;  %v764_v63 = vld [vmem:[%s2995_s3 + $0x9d0] sm:$0xff] }
 0x151   :  { %1616 = vmatprep.subr.bf16.mxu0 %v1615_v0  ;;  %v767_v0 = vld [vmem:[%s2995_s3 + $0x9e8] sm:$0xff]  ;;  %v1657_v3 = vpack.c.bf16 %v764_v63, %v762_v62  ;;  %v774_v57 = vsub.s32 0, %v773_v55 }
 0x152   :  { %v1659_v4 = vpack.c.bf16 %v769_v2, %v767_v0 }
 0x154   :  { %1618 = vmatpush1.bf16.msra.mxu0 %v1617_v7  ;;  %v768_v7 = vld [vmem:[%s2995_s3 + $0x9f0] sm:$0xff] }
 0x155   :  { %1620 = vmatprep.subr.bf16.mxu0 %v1619_v8  ;;  %v1661_v8 = vpack.c.bf16 %v768_v7, %v766_v6 }
 0x158   :  { %1622 = vmatpush1.bf16.msra.mxu0 %v1621_v13  ;;  %v1140_v13 = vld [vmem:[%s2997_s5 + $0x8] sm:$0xff] }
 0x159   :  { %1624 = vmatprep.subr.bf16.mxu0 %v1623_v14  ;;  %v1158_v14 = vld [vmem:[%s2997_s5 + $0x98] sm:$0xff]  ;;  %v1665_v16 = vpack.c.bf16 %v1140_v13, %v1139_v11 }
 0x15b   :  { %1666 = vmatpush3.bf16.msra.mxu1 %v1665_v16 }
 0x15c   :  { %1626 = vmatpush1.bf16.msra.mxu0 %v1625_v21  ;;  %v1159_v21 = vld [vmem:[%s2997_s5 + $0xa0] sm:$0xff] }
 0x15d   :  { %1628 = vmatprep.subr.bf16.mxu0 %v1627_v22  ;;  %v1160_v22 = vld [vmem:[%s2997_s5 + $0xa8] sm:$0xff] }
 0x15e   :  { %v1671_v24 = vpack.c.bf16 %v1160_v22, %v1159_v21 }
 0x160   :  { %1630 = vmatpush1.bf16.msra.mxu0 %v1629_v27  ;;  %v1161_v27 = vld [vmem:[%s2997_s5 + $0xb0] sm:$0xff] }
 0x161   :  { %1632 = vmatprep.subr.bf16.mxu0 %v1631_v15  ;;  %v1162_v15 = vld [vmem:[%s2997_s5 + $0xb8] sm:$0xff] }
 0x162   :  { %v1675_v28 = vpack.c.bf16 %v1162_v15, %v1161_v27 }
 0x164   :  { %1634 = vmatpush1.bf16.msra.mxu0 %v1633_v31  ;;  %v1163_v31 = vld [vmem:[%s2997_s5 + $0xc0] sm:$0xff] }
 0x165   :  { %1636 = vmatprep.subr.bf16.mxu0 %v1635_v32  ;;  %v1164_v32 = vld [vmem:[%s2997_s5 + $0xc8] sm:$0xff] }
 0x166   :  { %v1679_v33 = vpack.c.bf16 %v1164_v32, %v1163_v31 }
 0x168   :  { %1638 = vmatpush1.bf16.msra.mxu0 %v1637_v36  ;;  %v1165_v36 = vld [vmem:[%s2997_s5 + $0xd0] sm:$0xff] }
 0x169   :  { %1640 = vmatprep.subr.bf16.mxu0 %v1639_v37  ;;  %v1166_v37 = vld [vmem:[%s2997_s5 + $0xd8] sm:$0xff] }
 0x16a   :  { %v1683_v39 = vpack.c.bf16 %v1166_v37, %v1165_v36 }
 0x16c   :  { %1642 = vmatpush1.bf16.msra.mxu0 %v1641_v42  ;;  %v1167_v42 = vld [vmem:[%s2997_s5 + $0xe0] sm:$0xff] }
 0x16d   :  { %1644 = vmatprep.subr.bf16.mxu0 %v1643_v43  ;;  %v1168_v43 = vld [vmem:[%s2997_s5 + $0xe8] sm:$0xff] }
 0x16e   :  { %v1687_v45 = vpack.c.bf16 %v1168_v43, %v1167_v42 }
 0x170   :  { %1646 = vmatpush1.bf16.msra.mxu0 %v1645_v48  ;;  %v1689_v48 = vpack.c.bf16 %v1152_v47, %v1151_v46 }
 0x171   :  { %1648 = vmatprep.subr.bf16.mxu0 %v1647_v49  ;;  %v1169_v49 = vld [vmem:[%s2997_s5 + $0xf0] sm:$0xff] }
 0x172   :  { %v1691_v60 = vpack.c.bf16 %v1170_v50, %v1169_v49 }
 0x174   :  { %1650 = vmatpush1.bf16.msra.mxu0 %v1649_v53  ;;  %v1693_v53 = vpack.c.bf16 %v1154_v52, %v1153_v51 }
 0x175   :  { %1652 = vmatprep.subr.bf16.mxu0 %v1651_v54 }
 0x178   :  { %1654 = vmatpush1.bf16.msra.mxu0 %v1653_v58  ;;  %v770_v58 = vld [vmem:[%s2996_s4] sm:$0x3]  ;;  %s1739_s4 = smov [#allocation2]  }
 0x179   :  { %1656 = vmatprep.subr.bf16.mxu0 %v1655_v59  ;;  %v778_v59 = vsub.s32 1, %v773_v55  ;;  %v775_v62 = vrot.slane %v770_v58, %v774_v57  ;;  %s1268_s19 = sshll.u32 %s1739_s4, 4  ;;  %s1269_s19 = int_to_ptr.vmem [resolvable:$true] %s1268_s19 }
 0x17a   :  { %s1713_s6 = scalar_lea.vmem %s1269_s19, 32  ;;  %p1718_p1 = scmp.lt.s32.totalorder %s1269_s19, %s1269_s19 }
 0x17b   :  { %v779_v63 = vrot.slane %v770_v58, %v778_v59  ;;  %p1714_p0 = scmp.ne.s32.totalorder %s1269_s19, %s1713_s6  ;;  %p1719_p2 = scmp.lt.s32.totalorder %s1713_s6, %s1713_s6 }
 0x17c   :  { %1658 = vmatpush1.bf16.msra.mxu0 %v1657_v3 }
 0x17d   :  { %1660 = vmatprep.subr.bf16.mxu0 %v1659_v4  ;;  %p1720_p3 = por %p1719_p2, %p1718_p1 }
 0x17f   :  { %p1721_p4 = pnand %p1720_p3, %p1714_p0 }
 0x180   :  { %1662 = vmatpush1.bf16.msra.mxu0 %v1661_v8 }
 0x183   :  { %1131 = vmatmul.mubr.f32.vlgmr.msra.gmra.mrb[0].mxu0 %v2365_v61  ;;  %v1157_v61 = vld [vmem:[%s2997_s5 + $0x90] sm:$0xff] }
 0x184   :  { %v1667_v17 = vpack.c.bf16 %v1158_v14, %v1157_v61 }
 0x186   :  { %1668 = vmatprep.subr.bf16.mxu1 %v1667_v17 }
 0x187   :  { %1670 = vmatpush3.bf16.msra.mxu1 %v1669_v23 }
 0x188   :  { %1672 = vmatprep.subr.bf16.mxu1 %v1671_v24 }
 0x18b   :  { %1674 = vmatpush3.bf16.msra.mxu1 %v1673_v5 }
 0x18c   :  { %1676 = vmatprep.subr.bf16.mxu1 %v1675_v28 }
 0x18f   :  { %1678 = vmatpush3.bf16.msra.mxu1 %v1677_v19 }
 0x190   :  { %1680 = vmatprep.subr.bf16.mxu1 %v1679_v33 }
 0x193   :  { %1682 = vmatpush3.bf16.msra.mxu1 %v1681_v38 }
 0x194   :  { %1684 = vmatprep.subr.bf16.mxu1 %v1683_v39 }
 0x197   :  { %1686 = vmatpush3.bf16.msra.mxu1 %v1685_v44 }
 0x198   :  { %1688 = vmatprep.subr.bf16.mxu1 %v1687_v45 }
 0x19b   :  { %1690 = vmatpush3.bf16.msra.mxu1 %v1689_v48 }
 0x19c   :  { %1692 = vmatprep.subr.bf16.mxu1 %v1691_v60 }
 0x19f   :  { %1694 = vmatpush3.bf16.msra.mxu1 %v1693_v53 }
 0x214   :  { %v919_v54 = vpop.f32.mrb[16].mxu1 }
 0x215   :  { %v921_v1 = vpop.f32.mrb[17].mxu1  ;;  %v1695_v0 = vadd.f32 %v919_v54, %v775_v62 }
 0x216   :  { %v1697_v2 = vadd.f32 %v921_v1, %v779_v63 }
 0x256   :  { %v1132_v3 = vpop.f32.mrb[0].mxu0 }
 0x257   :  { %v1696_v4 = vadd.f32 %v1695_v0, %v1132_v3  ;;  %v1134_v6 = vpop.f32.mrb[1].mxu0 }
 0x258   :  { %v1698_v7 = vadd.f32 %v1697_v2, %v1134_v6 }
 0x259   :  { %v1137_v9 = vmax.f32 %v1696_v4, 0.0 }
 0x25a   :  { %v1138_v8 = vmax.f32 %v1698_v7, 0.0 }
 0x25c   :  { %1242 = vmatprep.mubr.f32.mxu1 %v1138_v8 }
 0x25d   :  { %1243 = vmatmul.mubr.f32.vlgmr.msra.gmra.mrb[18].mxu1 %v1137_v9 }
 0x330   :  { %v1324_v10 = vpop.f32.mrb[18].mxu1 }
 0x331   :  { %v1325_v11 = vpop.f32.mrb[19].mxu1 }
 0x332   :  { %v1326_v13 = vadd.f32 %v1325_v11, %v1324_v10 }
 0x334   :  { %v1245_v61 = vadd.f32 %v1326_v13, %v1291_v12 }
 0x336   :  { %v1249_v14 = vsel %vm1248_vm2, %v1245_v61, -inf }
 0x337   :  { %1250 = vmax.xlane.f32.xlu1 %v1249_v14 }
 0x3c4   :  { %v1251_v16 = vpop.xlane.xlu1 %1250 }
 0x3c5   :  { %v1252_v17 = vsub.f32 %v1245_v61, %v1251_v16 }
 0x3c7   :  { %v1253_v18 = vmul.f32 1.442695, %v1252_v17 }
 0x3c9   :  { %1709 = vpow2.f32 %v1253_v18 }
 0x3d3   :  { %v1710_v20 = vpop.eup %1709 }
 0x3d4   :  { %v1255_v21 = vsel %vm1248_vm2, %v1710_v20, 0.0 }
 0x3d5   :  { %1256 = vadd.xlane.f32.xlu1 %v1255_v21 }
 0x462   :  { %v1257_v22 = vpop.xlane.xlu1 %1256 }
 0x463   :  { %1711 = vlog2.f32 %v1257_v22 }
 0x46d   :  { %v1712_v23 = vpop.eup %1711 }
 0x46e   :  { %v1259_v24 = vmul.f32 0.6931472, %v1712_v23 }
 0x470   :  { %v1260_v25 = vsub.f32 %v1252_v17, %v1259_v24 }
 0x472   :  { %1261 = vst [vmem:[#allocation2] sm:$0x3] %v1260_v25 }
 0x473   :  { %1724 = shalt.err (!%p1721_p4)
}
 0x474   :  { %s1725_s22 = scalar_lea.hbm %s2999_s7, 32 }
 0x475   :  { %p1726_p5 = scmp.ne.s32.totalorder %s2999_s7, %s1725_s22  ;;  %p1729_p6 = scmp.lt.u32.totalorder %s1725_s22, %s2999_s7 }
 0x477   :  { %p1731_p7 = pnand %p1729_p6, %p1726_p5 }
 0x479   :  { %1734 = shalt.err (!%p1731_p7)
}
 0x47a   :  { %1271 = dma.vmem_to_hbm [thread:$0]  %s1269_s19, 32, %s2999_s7, [#allocation3]  }
 0x47b   :  { %1735 = dma.done.wait [#allocation3], 32  }
 0x47c   :  { %1736 = vsyncadd [#allocation3], 4294967264 }
 0x47d   :  { %1275 = vsyncpa [#allocation3], 1 }

</bundles_post_ra>
